<compile_context>
chip_gen: v7x
topology: tpu7x:2x2x1
jax: 0.10.0
libtpu: 0.0.40
codegen_flags: <defaults>
</compile_context>

<pallas_src>
import jax
import jax.numpy as jnp
from jax.experimental import pallas as pl
from jax.experimental.pallas import tpu as pltpu

HIDDEN = 16          # hidden_chans of the PyTorch module
C_SPEC = 9           # spectral length (C in 9..11 so MaxPool1d(3) -> length 1)
BN_EPS = 1e-5

L1, L2, L3 = 7, 5, 3                 # conv positions actually needed by the pool
R1 = L1 * HIDDEN                     # 112  (conv1 output rows)
R2 = L2 * 2 * HIDDEN                 # 160  (conv2 output rows)
R3 = L3 * 4 * HIDDEN                 # 192  (conv3 output rows)
K1E = R1 + HIDDEN                    # 128  (h1 rows incl. ones block)
R2E = R2 + HIDDEN                    # 176  (h2 rows incl. ones block)
COUT = 4 * HIDDEN                    # 64   (final channels)
TN_DEFAULT = 4096                    # pixels (lanes) per grid step; sweepable


def _round_up(a, m):
    return ((a + m - 1) // m) * m


# ----------------------------------------------------------------------------
# Pallas kernel: VPU conv1 + 2 banded bf16 matmuls (f32 acc) + relu + max
# ----------------------------------------------------------------------------
def spectrum_kernel(x_ref, w1_ref, w2_ref, w3_ref, o_ref):
    tn = x_ref.shape[-1]
    x = x_ref[...].astype(jnp.float32)            # (C, TN)
    w1 = w1_ref[...]                              # (16, 4) f32: taps 0..2, bias

    # ---- conv1 + bn1 + relu on the VPU: 7 position blocks of 16 channels ---
    bias1 = w1[:, 3:4]                            # (16, 1)
    blocks = []
    for t in range(L1):
        acc = bias1 + w1[:, 0:1] * x[t:t + 1, :] \
                    + w1[:, 1:2] * x[t + 1:t + 2, :] \
                    + w1[:, 2:3] * x[t + 2:t + 3, :]
        blocks.append(jnp.maximum(acc, 0.0))
    blocks.append(jnp.ones((HIDDEN, tn), jnp.float32))   # ones block -> folds b2
    h1 = jnp.concatenate(blocks, axis=0).astype(jnp.bfloat16)   # (128, TN)

    # ---- conv2 + bn2 + relu (bias folded; rows R2.. reproduce the ones) ----
    h2 = jnp.dot(w2_ref[...], h1, preferred_element_type=jnp.float32)   # (176,TN)
    h2 = jnp.maximum(h2, 0.0).astype(jnp.bfloat16)

    # ---- conv3 + bn3 + relu (bias folded via the ones rows of h2) ----------
    h3 = jnp.dot(w3_ref[...], h2, preferred_element_type=jnp.float32)   # (192,TN)
    h3 = jnp.maximum(h3, 0.0)

    # ---- MaxPool1d(3): max over the three 64-row position blocks -----------
    out = jnp.maximum(jnp.maximum(h3[0:COUT, :], h3[COUT:2 * COUT, :]),
                      h3[2 * COUT:3 * COUT, :])
    o_ref[...] = out.astype(o_ref.dtype)


# ----------------------------------------------------------------------------
# Wrapper: BN folding, banded-weight construction (biases folded), pallas_call
# ----------------------------------------------------------------------------
def fold_bn(w, b, gamma, beta, mean, var):
    """Fold eval-mode BatchNorm1d into Conv1d (w: (Cout,Cin,3), b: (Cout,))."""
    scale = gamma / jnp.sqrt(var + BN_EPS)
    return w * scale[:, None, None], (b - mean) * scale + beta


def build_kernel_weights(params):
    """conv1 -> (16,4) VPU params; conv2/conv3 -> banded matrices w/ bias folded."""
    (w1, b1, bn1), (w2, b2, bn2), (w3, b3, bn3) = params
    w1f, b1f = fold_bn(w1, b1, *bn1)
    w2f, b2f = fold_bn(w2, b2, *bn2)
    w3f, b3f = fold_bn(w3, b3, *bn3)

    # conv1 parameters for the VPU path: columns [tap0, tap1, tap2, bias]
    W1p = jnp.concatenate([w1f[:, 0, :], b1f[:, None]], axis=1).astype(jnp.float32)

    # conv2: (R2E, K1E).  Columns 0..111 banded weights; column 112 multiplies
    # the ones row of h1 (bias fold); rows 160..175 reproduce the ones for conv3.
    W2m = jnp.zeros((R2E, K1E), jnp.float32)
    for t in range(L2):
        for k in range(3):
            W2m = W2m.at[t * 2 * HIDDEN:(t + 1) * 2 * HIDDEN,
                         (t + k) * HIDDEN:(t + k + 1) * HIDDEN].set(w2f[:, :, k])
    W2m = W2m.at[0:R2, R1].set(jnp.tile(b2f, L2))
    W2m = W2m.at[R2:R2E, R1].set(1.0)

    # conv3: (R3, R2E).  Column 160 multiplies the ones rows of h2 (bias fold).
    W3m = jnp.zeros((R3, R2E), jnp.float32)
    for t in range(L3):
        for k in range(3):
            W3m = W3m.at[t * 4 * HIDDEN:(t + 1) * 4 * HIDDEN,
                         (t + k) * 2 * HIDDEN:(t + k + 1) * 2 * HIDDEN].set(w3f[:, :, k])
    W3m = W3m.at[0:R3, R2].set(jnp.tile(b3f, L3))

    return W1p, W2m.astype(jnp.bfloat16), W3m.astype(jnp.bfloat16)


def spectrum_head_forward(x, params, tn=TN_DEFAULT):
    """x: (B, C, H, W) NCHW (like the PyTorch module). Returns (B, 4*HIDDEN, H, W)."""
    B, C, H, W = x.shape
    assert 3 <= C - 6 <= 5, "MaxPool1d(3) output length must be 1 (C in 9..11)"

    W1p, W2m, W3m = build_kernel_weights(params)

    HW = H * W
    TN = min(tn, _round_up(HW, 128))       # lane tile: multiple of 128
    grid = (B, pl.cdiv(HW, TN))            # ragged final block handled by Pallas

    xs = x.reshape(B, C, HW).astype(jnp.bfloat16)   # free reshape, halve input DMA

    flops = int(B * HW) * (6 * L1 * HIDDEN + 2 * (R2E * K1E + R3 * R2E))
    bytes_acc = int(B * HW) * (2 * C + 4 * COUT) \
        + 2 * (R2E * K1E + R3 * R2E) + 4 * HIDDEN * 4

    out = pl.pallas_call(
        spectrum_kernel,
        out_shape=jax.ShapeDtypeStruct((B, COUT, HW), jnp.float32),
        grid=grid,
        in_specs=[
            pl.BlockSpec((None, C, TN), lambda b, j: (b, 0, j)),
            pl.BlockSpec((HIDDEN, 4), lambda b, j: (0, 0)),
            pl.BlockSpec((R2E, K1E), lambda b, j: (0, 0)),
            pl.BlockSpec((R3, R2E), lambda b, j: (0, 0)),
        ],
        out_specs=pl.BlockSpec((None, COUT, TN), lambda b, j: (b, 0, j)),
        compiler_params=pltpu.CompilerParams(
            dimension_semantics=("parallel", "parallel"),
            vmem_limit_bytes=32 * 1024 * 1024,
        ),
        cost_estimate=pl.CostEstimate(
            flops=flops, transcendentals=0, bytes_accessed=bytes_acc),
    )(xs, W1p, W2m, W3m)

    return out.reshape(B, COUT, H, W)      # already channel-major NCHW, no transpose


# ----------------------------------------------------------------------------
# Pure-JAX reference (un-folded BN, explicit convs) for correctness checking
# ----------------------------------------------------------------------------
def reference_forward(x, params):
    B, C, H, W = x.shape
    (w1, b1, bn1), (w2, b2, bn2), (w3, b3, bn3) = params
    xs = jnp.transpose(x, (0, 2, 3, 1)).reshape(B * H * W, 1, C).astype(jnp.float32)

    def conv1d(h, w, b):  # h (N,Cin,L), w (Cout,Cin,3)
        L = h.shape[-1]
        outs = [jnp.einsum("ncl,ocl->no", h[:, :, t:t + 3], w) + b for t in range(L - 2)]
        return jnp.stack(outs, axis=-1)

    def bn(h, p):
        g, be, m, v = p
        return (h - m[None, :, None]) / jnp.sqrt(v[None, :, None] + BN_EPS) \
            * g[None, :, None] + be[None, :, None]

    h = jax.nn.relu(bn(conv1d(xs, w1, b1), bn1))
    h = jax.nn.relu(bn(conv1d(h, w2, b2), bn2))
    h = jax.nn.relu(bn(conv1d(h, w3, b3), bn3))
    h = jnp.max(h[:, :, 0:3], axis=-1)            # MaxPool1d(3) -> length 1, squeezed
    return jnp.transpose(h.reshape(B, H, W, -1), (0, 3, 1, 2))


# ----------------------------------------------------------------------------
def make_params(key):
    ks = jax.random.split(key, 12)

    def conv(kw, kb, cout, cin):
        w = 0.1 * jax.random.normal(kw, (cout, cin, 3), jnp.float32)
        b = 0.1 * jax.random.normal(kb, (cout,), jnp.float32)
        return w, b

    def bn(kg, kb, c):
        gamma = 1.0 + 0.1 * jax.random.normal(kg, (c,), jnp.float32)
        beta = 0.1 * jax.random.normal(kb, (c,), jnp.float32)
        mean = 0.05 * jnp.arange(c, dtype=jnp.float32) / c
        var = 1.0 + 0.1 * jnp.arange(c, dtype=jnp.float32) / c
        return (gamma, beta, mean, var)

    w1, b1 = conv(ks[0], ks[1], HIDDEN, 1)
    w2, b2 = conv(ks[2], ks[3], 2 * HIDDEN, HIDDEN)
    w3, b3 = conv(ks[4], ks[5], 4 * HIDDEN, 2 * HIDDEN)
    return ((w1, b1, bn(ks[6], ks[7], HIDDEN)),
            (w2, b2, bn(ks[8], ks[9], 2 * HIDDEN)),
            (w3, b3, bn(ks[10], ks[11], 4 * HIDDEN)))


if __name__ == "__main__":
    key = jax.random.PRNGKey(0)
    kx, kp = jax.random.split(key)
    B, C, H, W = 2, C_SPEC, 16, 16        # C=9 so the conv/pool chain yields length 1
    x = jax.random.normal(kx, (B, C, H, W), jnp.float32)
    params = make_params(kp)

    out = jax.block_until_ready(spectrum_head_forward(x, params))
    assert out.shape == (B, 4 * HIDDEN, H, W), out.shape

    ref = jax.block_until_ready(reference_forward(x, params))
    # bf16 matmul inputs (f32 accumulation) -> relaxed tolerance vs f32 reference
    assert jnp.allclose(out, ref, rtol=5e-2, atol=5e-2), \
        float(jnp.max(jnp.abs(out - ref)))

    print("KERNEL_OK")
</pallas_src>

<mosaic_0001>
module attributes {stable_mosaic.version = 11 : i64} {
  func.func @spectrum_kernel(%arg0: i32, %arg1: i32, %arg2: memref<1x9x256xbf16, #tpu.memory_space<vmem>>, %arg3: memref<16x4xf32, #tpu.memory_space<vmem>>, %arg4: memref<176x128xbf16, #tpu.memory_space<vmem>>, %arg5: memref<192x176xbf16, #tpu.memory_space<vmem>>, %arg6: memref<1x64x256xf32, #tpu.memory_space<vmem>>) attributes {dimension_semantics = [#tpu.dimension_semantics<parallel>, #tpu.dimension_semantics<parallel>], iteration_bounds = array<i64: 2, 1>, scalar_prefetch = 0 : i64, scratch_operands = 0 : i64, tpu.core_type = #tpu.core_type<tc>, window_params = [{transform_indices = @transform_0, window_bounds = array<i64: 1, 9, 256>}, {pipeline_mode = #tpu.pipeline_mode<synchronous>, transform_indices = @transform_1, window_bounds = array<i64: 16, 4>}, {pipeline_mode = #tpu.pipeline_mode<synchronous>, transform_indices = @transform_2, window_bounds = array<i64: 176, 128>}, {pipeline_mode = #tpu.pipeline_mode<synchronous>, transform_indices = @transform_3, window_bounds = array<i64: 192, 176>}, {transform_indices = @transform_4, window_bounds = array<i64: 1, 64, 256>}]} {
    %c0 = arith.constant 0 : index
    %c0_0 = arith.constant 0 : index
    %c0_1 = arith.constant 0 : index
    %0 = vector.load %arg2[%c0, %c0_0, %c0_1] : memref<1x9x256xbf16, #tpu.memory_space<vmem>>, vector<1x9x256xbf16>
    %1 = vector.shape_cast %0 : vector<1x9x256xbf16> to vector<9x256xbf16>
    %2 = arith.extf %1 : vector<9x256xbf16> to vector<9x256xf32>
    %c0_2 = arith.constant 0 : index
    %c0_3 = arith.constant 0 : index
    %3 = vector.load %arg3[%c0_2, %c0_3] : memref<16x4xf32, #tpu.memory_space<vmem>>, vector<16x4xf32>
    %4 = vector.extract_strided_slice %3 {offsets = [0, 3], sizes = [16, 1], strides = [1, 1]} : vector<16x4xf32> to vector<16x1xf32>
    %5 = vector.extract_strided_slice %3 {offsets = [0, 0], sizes = [16, 1], strides = [1, 1]} : vector<16x4xf32> to vector<16x1xf32>
    %6 = vector.extract_strided_slice %2 {offsets = [0, 0], sizes = [1, 256], strides = [1, 1]} : vector<9x256xf32> to vector<1x256xf32>
    %7 = vector.broadcast %5 : vector<16x1xf32> to vector<16x256xf32>
    %8 = vector.broadcast %6 : vector<1x256xf32> to vector<16x256xf32>
    %9 = arith.mulf %7, %8 : vector<16x256xf32>
    %10 = vector.broadcast %4 : vector<16x1xf32> to vector<16x256xf32>
    %11 = arith.addf %10, %9 : vector<16x256xf32>
    %12 = vector.extract_strided_slice %3 {offsets = [0, 1], sizes = [16, 1], strides = [1, 1]} : vector<16x4xf32> to vector<16x1xf32>
    %13 = vector.extract_strided_slice %2 {offsets = [1, 0], sizes = [1, 256], strides = [1, 1]} : vector<9x256xf32> to vector<1x256xf32>
    %14 = vector.broadcast %12 : vector<16x1xf32> to vector<16x256xf32>
    %15 = vector.broadcast %13 : vector<1x256xf32> to vector<16x256xf32>
    %16 = arith.mulf %14, %15 : vector<16x256xf32>
    %17 = arith.addf %11, %16 : vector<16x256xf32>
    %18 = vector.extract_strided_slice %3 {offsets = [0, 2], sizes = [16, 1], strides = [1, 1]} : vector<16x4xf32> to vector<16x1xf32>
    %19 = vector.extract_strided_slice %2 {offsets = [2, 0], sizes = [1, 256], strides = [1, 1]} : vector<9x256xf32> to vector<1x256xf32>
    %20 = vector.broadcast %18 : vector<16x1xf32> to vector<16x256xf32>
    %21 = vector.broadcast %19 : vector<1x256xf32> to vector<16x256xf32>
    %22 = arith.mulf %20, %21 : vector<16x256xf32>
    %23 = arith.addf %17, %22 : vector<16x256xf32>
    %cst = arith.constant 0.000000e+00 : f32
    %24 = vector.broadcast %cst : f32 to vector<16x256xf32>
    %25 = arith.maximumf %23, %24 : vector<16x256xf32>
    %26 = vector.extract_strided_slice %3 {offsets = [0, 0], sizes = [16, 1], strides = [1, 1]} : vector<16x4xf32> to vector<16x1xf32>
    %27 = vector.extract_strided_slice %2 {offsets = [1, 0], sizes = [1, 256], strides = [1, 1]} : vector<9x256xf32> to vector<1x256xf32>
    %28 = vector.broadcast %26 : vector<16x1xf32> to vector<16x256xf32>
    %29 = vector.broadcast %27 : vector<1x256xf32> to vector<16x256xf32>
    %30 = arith.mulf %28, %29 : vector<16x256xf32>
    %31 = vector.broadcast %4 : vector<16x1xf32> to vector<16x256xf32>
    %32 = arith.addf %31, %30 : vector<16x256xf32>
    %33 = vector.extract_strided_slice %3 {offsets = [0, 1], sizes = [16, 1], strides = [1, 1]} : vector<16x4xf32> to vector<16x1xf32>
    %34 = vector.extract_strided_slice %2 {offsets = [2, 0], sizes = [1, 256], strides = [1, 1]} : vector<9x256xf32> to vector<1x256xf32>
    %35 = vector.broadcast %33 : vector<16x1xf32> to vector<16x256xf32>
    %36 = vector.broadcast %34 : vector<1x256xf32> to vector<16x256xf32>
    %37 = arith.mulf %35, %36 : vector<16x256xf32>
    %38 = arith.addf %32, %37 : vector<16x256xf32>
    %39 = vector.extract_strided_slice %3 {offsets = [0, 2], sizes = [16, 1], strides = [1, 1]} : vector<16x4xf32> to vector<16x1xf32>
    %40 = vector.extract_strided_slice %2 {offsets = [3, 0], sizes = [1, 256], strides = [1, 1]} : vector<9x256xf32> to vector<1x256xf32>
    %41 = vector.broadcast %39 : vector<16x1xf32> to vector<16x256xf32>
    %42 = vector.broadcast %40 : vector<1x256xf32> to vector<16x256xf32>
    %43 = arith.mulf %41, %42 : vector<16x256xf32>
    %44 = arith.addf %38, %43 : vector<16x256xf32>
    %cst_4 = arith.constant 0.000000e+00 : f32
    %45 = vector.broadcast %cst_4 : f32 to vector<16x256xf32>
    %46 = arith.maximumf %44, %45 : vector<16x256xf32>
    %47 = vector.extract_strided_slice %3 {offsets = [0, 0], sizes = [16, 1], strides = [1, 1]} : vector<16x4xf32> to vector<16x1xf32>
    %48 = vector.extract_strided_slice %2 {offsets = [2, 0], sizes = [1, 256], strides = [1, 1]} : vector<9x256xf32> to vector<1x256xf32>
    %49 = vector.broadcast %47 : vector<16x1xf32> to vector<16x256xf32>
    %50 = vector.broadcast %48 : vector<1x256xf32> to vector<16x256xf32>
    %51 = arith.mulf %49, %50 : vector<16x256xf32>
    %52 = vector.broadcast %4 : vector<16x1xf32> to vector<16x256xf32>
    %53 = arith.addf %52, %51 : vector<16x256xf32>
    %54 = vector.extract_strided_slice %3 {offsets = [0, 1], sizes = [16, 1], strides = [1, 1]} : vector<16x4xf32> to vector<16x1xf32>
    %55 = vector.extract_strided_slice %2 {offsets = [3, 0], sizes = [1, 256], strides = [1, 1]} : vector<9x256xf32> to vector<1x256xf32>
    %56 = vector.broadcast %54 : vector<16x1xf32> to vector<16x256xf32>
    %57 = vector.broadcast %55 : vector<1x256xf32> to vector<16x256xf32>
    %58 = arith.mulf %56, %57 : vector<16x256xf32>
    %59 = arith.addf %53, %58 : vector<16x256xf32>
    %60 = vector.extract_strided_slice %3 {offsets = [0, 2], sizes = [16, 1], strides = [1, 1]} : vector<16x4xf32> to vector<16x1xf32>
    %61 = vector.extract_strided_slice %2 {offsets = [4, 0], sizes = [1, 256], strides = [1, 1]} : vector<9x256xf32> to vector<1x256xf32>
    %62 = vector.broadcast %60 : vector<16x1xf32> to vector<16x256xf32>
    %63 = vector.broadcast %61 : vector<1x256xf32> to vector<16x256xf32>
    %64 = arith.mulf %62, %63 : vector<16x256xf32>
    %65 = arith.addf %59, %64 : vector<16x256xf32>
    %cst_5 = arith.constant 0.000000e+00 : f32
    %66 = vector.broadcast %cst_5 : f32 to vector<16x256xf32>
    %67 = arith.maximumf %65, %66 : vector<16x256xf32>
    %68 = vector.extract_strided_slice %3 {offsets = [0, 0], sizes = [16, 1], strides = [1, 1]} : vector<16x4xf32> to vector<16x1xf32>
    %69 = vector.extract_strided_slice %2 {offsets = [3, 0], sizes = [1, 256], strides = [1, 1]} : vector<9x256xf32> to vector<1x256xf32>
    %70 = vector.broadcast %68 : vector<16x1xf32> to vector<16x256xf32>
    %71 = vector.broadcast %69 : vector<1x256xf32> to vector<16x256xf32>
    %72 = arith.mulf %70, %71 : vector<16x256xf32>
    %73 = vector.broadcast %4 : vector<16x1xf32> to vector<16x256xf32>
    %74 = arith.addf %73, %72 : vector<16x256xf32>
    %75 = vector.extract_strided_slice %3 {offsets = [0, 1], sizes = [16, 1], strides = [1, 1]} : vector<16x4xf32> to vector<16x1xf32>
    %76 = vector.extract_strided_slice %2 {offsets = [4, 0], sizes = [1, 256], strides = [1, 1]} : vector<9x256xf32> to vector<1x256xf32>
    %77 = vector.broadcast %75 : vector<16x1xf32> to vector<16x256xf32>
    %78 = vector.broadcast %76 : vector<1x256xf32> to vector<16x256xf32>
    %79 = arith.mulf %77, %78 : vector<16x256xf32>
    %80 = arith.addf %74, %79 : vector<16x256xf32>
    %81 = vector.extract_strided_slice %3 {offsets = [0, 2], sizes = [16, 1], strides = [1, 1]} : vector<16x4xf32> to vector<16x1xf32>
    %82 = vector.extract_strided_slice %2 {offsets = [5, 0], sizes = [1, 256], strides = [1, 1]} : vector<9x256xf32> to vector<1x256xf32>
    %83 = vector.broadcast %81 : vector<16x1xf32> to vector<16x256xf32>
    %84 = vector.broadcast %82 : vector<1x256xf32> to vector<16x256xf32>
    %85 = arith.mulf %83, %84 : vector<16x256xf32>
    %86 = arith.addf %80, %85 : vector<16x256xf32>
    %cst_6 = arith.constant 0.000000e+00 : f32
    %87 = vector.broadcast %cst_6 : f32 to vector<16x256xf32>
    %88 = arith.maximumf %86, %87 : vector<16x256xf32>
    %89 = vector.extract_strided_slice %3 {offsets = [0, 0], sizes = [16, 1], strides = [1, 1]} : vector<16x4xf32> to vector<16x1xf32>
    %90 = vector.extract_strided_slice %2 {offsets = [4, 0], sizes = [1, 256], strides = [1, 1]} : vector<9x256xf32> to vector<1x256xf32>
    %91 = vector.broadcast %89 : vector<16x1xf32> to vector<16x256xf32>
    %92 = vector.broadcast %90 : vector<1x256xf32> to vector<16x256xf32>
    %93 = arith.mulf %91, %92 : vector<16x256xf32>
    %94 = vector.broadcast %4 : vector<16x1xf32> to vector<16x256xf32>
    %95 = arith.addf %94, %93 : vector<16x256xf32>
    %96 = vector.extract_strided_slice %3 {offsets = [0, 1], sizes = [16, 1], strides = [1, 1]} : vector<16x4xf32> to vector<16x1xf32>
    %97 = vector.extract_strided_slice %2 {offsets = [5, 0], sizes = [1, 256], strides = [1, 1]} : vector<9x256xf32> to vector<1x256xf32>
    %98 = vector.broadcast %96 : vector<16x1xf32> to vector<16x256xf32>
    %99 = vector.broadcast %97 : vector<1x256xf32> to vector<16x256xf32>
    %100 = arith.mulf %98, %99 : vector<16x256xf32>
    %101 = arith.addf %95, %100 : vector<16x256xf32>
    %102 = vector.extract_strided_slice %3 {offsets = [0, 2], sizes = [16, 1], strides = [1, 1]} : vector<16x4xf32> to vector<16x1xf32>
    %103 = vector.extract_strided_slice %2 {offsets = [6, 0], sizes = [1, 256], strides = [1, 1]} : vector<9x256xf32> to vector<1x256xf32>
    %104 = vector.broadcast %102 : vector<16x1xf32> to vector<16x256xf32>
    %105 = vector.broadcast %103 : vector<1x256xf32> to vector<16x256xf32>
    %106 = arith.mulf %104, %105 : vector<16x256xf32>
    %107 = arith.addf %101, %106 : vector<16x256xf32>
    %cst_7 = arith.constant 0.000000e+00 : f32
    %108 = vector.broadcast %cst_7 : f32 to vector<16x256xf32>
    %109 = arith.maximumf %107, %108 : vector<16x256xf32>
    %110 = vector.extract_strided_slice %3 {offsets = [0, 0], sizes = [16, 1], strides = [1, 1]} : vector<16x4xf32> to vector<16x1xf32>
    %111 = vector.extract_strided_slice %2 {offsets = [5, 0], sizes = [1, 256], strides = [1, 1]} : vector<9x256xf32> to vector<1x256xf32>
    %112 = vector.broadcast %110 : vector<16x1xf32> to vector<16x256xf32>
    %113 = vector.broadcast %111 : vector<1x256xf32> to vector<16x256xf32>
    %114 = arith.mulf %112, %113 : vector<16x256xf32>
    %115 = vector.broadcast %4 : vector<16x1xf32> to vector<16x256xf32>
    %116 = arith.addf %115, %114 : vector<16x256xf32>
    %117 = vector.extract_strided_slice %3 {offsets = [0, 1], sizes = [16, 1], strides = [1, 1]} : vector<16x4xf32> to vector<16x1xf32>
    %118 = vector.extract_strided_slice %2 {offsets = [6, 0], sizes = [1, 256], strides = [1, 1]} : vector<9x256xf32> to vector<1x256xf32>
    %119 = vector.broadcast %117 : vector<16x1xf32> to vector<16x256xf32>
    %120 = vector.broadcast %118 : vector<1x256xf32> to vector<16x256xf32>
    %121 = arith.mulf %119, %120 : vector<16x256xf32>
    %122 = arith.addf %116, %121 : vector<16x256xf32>
    %123 = vector.extract_strided_slice %3 {offsets = [0, 2], sizes = [16, 1], strides = [1, 1]} : vector<16x4xf32> to vector<16x1xf32>
    %124 = vector.extract_strided_slice %2 {offsets = [7, 0], sizes = [1, 256], strides = [1, 1]} : vector<9x256xf32> to vector<1x256xf32>
    %125 = vector.broadcast %123 : vector<16x1xf32> to vector<16x256xf32>
    %126 = vector.broadcast %124 : vector<1x256xf32> to vector<16x256xf32>
    %127 = arith.mulf %125, %126 : vector<16x256xf32>
    %128 = arith.addf %122, %127 : vector<16x256xf32>
    %cst_8 = arith.constant 0.000000e+00 : f32
    %129 = vector.broadcast %cst_8 : f32 to vector<16x256xf32>
    %130 = arith.maximumf %128, %129 : vector<16x256xf32>
    %131 = vector.extract_strided_slice %3 {offsets = [0, 0], sizes = [16, 1], strides = [1, 1]} : vector<16x4xf32> to vector<16x1xf32>
    %132 = vector.extract_strided_slice %2 {offsets = [6, 0], sizes = [1, 256], strides = [1, 1]} : vector<9x256xf32> to vector<1x256xf32>
    %133 = vector.broadcast %131 : vector<16x1xf32> to vector<16x256xf32>
    %134 = vector.broadcast %132 : vector<1x256xf32> to vector<16x256xf32>
    %135 = arith.mulf %133, %134 : vector<16x256xf32>
    %136 = vector.broadcast %4 : vector<16x1xf32> to vector<16x256xf32>
    %137 = arith.addf %136, %135 : vector<16x256xf32>
    %138 = vector.extract_strided_slice %3 {offsets = [0, 1], sizes = [16, 1], strides = [1, 1]} : vector<16x4xf32> to vector<16x1xf32>
    %139 = vector.extract_strided_slice %2 {offsets = [7, 0], sizes = [1, 256], strides = [1, 1]} : vector<9x256xf32> to vector<1x256xf32>
    %140 = vector.broadcast %138 : vector<16x1xf32> to vector<16x256xf32>
    %141 = vector.broadcast %139 : vector<1x256xf32> to vector<16x256xf32>
    %142 = arith.mulf %140, %141 : vector<16x256xf32>
    %143 = arith.addf %137, %142 : vector<16x256xf32>
    %144 = vector.extract_strided_slice %3 {offsets = [0, 2], sizes = [16, 1], strides = [1, 1]} : vector<16x4xf32> to vector<16x1xf32>
    %145 = vector.extract_strided_slice %2 {offsets = [8, 0], sizes = [1, 256], strides = [1, 1]} : vector<9x256xf32> to vector<1x256xf32>
    %146 = vector.broadcast %144 : vector<16x1xf32> to vector<16x256xf32>
    %147 = vector.broadcast %145 : vector<1x256xf32> to vector<16x256xf32>
    %148 = arith.mulf %146, %147 : vector<16x256xf32>
    %149 = arith.addf %143, %148 : vector<16x256xf32>
    %cst_9 = arith.constant 0.000000e+00 : f32
    %150 = vector.broadcast %cst_9 : f32 to vector<16x256xf32>
    %151 = arith.maximumf %149, %150 : vector<16x256xf32>
    %cst_10 = arith.constant 1.000000e+00 : f32
    %152 = vector.broadcast %cst_10 : f32 to vector<16x256xf32>
    %153 = tpu.concatenate %25, %46, %67, %88, %109, %130, %151, %152 in 0 : vector<16x256xf32>, vector<16x256xf32>, vector<16x256xf32>, vector<16x256xf32>, vector<16x256xf32>, vector<16x256xf32>, vector<16x256xf32>, vector<16x256xf32> -> vector<128x256xf32>
    %154 = arith.truncf %153 : vector<128x256xf32> to vector<128x256xbf16>
    %c0_11 = arith.constant 0 : index
    %c0_12 = arith.constant 0 : index
    %155 = vector.load %arg4[%c0_11, %c0_12] : memref<176x128xbf16, #tpu.memory_space<vmem>>, vector<176x128xbf16>
    %cst_13 = arith.constant dense<0.000000e+00> : vector<176x256xf32>
    %156 = tpu.matmul %155, %154, %cst_13 {dimension_numbers = #tpu.dot_dimension_numbers<[1], [0], [0], [1], [0, 0, 1, 1], [], []>} : vector<176x128xbf16>, vector<128x256xbf16>, vector<176x256xf32> -> vector<176x256xf32>
    %cst_14 = arith.constant 0.000000e+00 : f32
    %157 = vector.broadcast %cst_14 : f32 to vector<176x256xf32>
    %158 = arith.maximumf %156, %157 : vector<176x256xf32>
    %159 = arith.truncf %158 : vector<176x256xf32> to vector<176x256xbf16>
    %c0_15 = arith.constant 0 : index
    %c0_16 = arith.constant 0 : index
    %160 = vector.load %arg5[%c0_15, %c0_16] : memref<192x176xbf16, #tpu.memory_space<vmem>>, vector<192x176xbf16>
    %cst_17 = arith.constant dense<0.000000e+00> : vector<192x256xf32>
    %161 = tpu.matmul %160, %159, %cst_17 {dimension_numbers = #tpu.dot_dimension_numbers<[1], [0], [0], [1], [0, 0, 1, 1], [], []>} : vector<192x176xbf16>, vector<176x256xbf16>, vector<192x256xf32> -> vector<192x256xf32>
    %cst_18 = arith.constant 0.000000e+00 : f32
    %162 = vector.broadcast %cst_18 : f32 to vector<192x256xf32>
    %163 = arith.maximumf %161, %162 : vector<192x256xf32>
    %164 = vector.extract_strided_slice %163 {offsets = [0, 0], sizes = [64, 256], strides = [1, 1]} : vector<192x256xf32> to vector<64x256xf32>
    %165 = vector.extract_strided_slice %163 {offsets = [64, 0], sizes = [64, 256], strides = [1, 1]} : vector<192x256xf32> to vector<64x256xf32>
    %166 = arith.maximumf %164, %165 : vector<64x256xf32>
    %167 = vector.extract_strided_slice %163 {offsets = [128, 0], sizes = [64, 256], strides = [1, 1]} : vector<192x256xf32> to vector<64x256xf32>
    %168 = arith.maximumf %166, %167 : vector<64x256xf32>
    %c0_19 = arith.constant 0 : index
    %c0_20 = arith.constant 0 : index
    %c0_21 = arith.constant 0 : index
    %169 = vector.load %arg6[%c0_19, %c0_20, %c0_21] : memref<1x64x256xf32, #tpu.memory_space<vmem>>, vector<1x64x256xf32>
    %170 = vector.shape_cast %169 : vector<1x64x256xf32> to vector<64x256xf32>
    %171 = vector.shape_cast %168 : vector<64x256xf32> to vector<1x64x256xf32>
    tpu.vector_store %arg6[%c0_19, %c0_20, %c0_21], %171 {strides = array<i32>} : memref<1x64x256xf32, #tpu.memory_space<vmem>>, vector<1x64x256xf32>,
    return
  }
  func.func @transform_0(%arg0: i32, %arg1: i32) -> (i32, i32, i32) {
    %c0_i32 = arith.constant 0 : i32
    %c0_i32_0 = arith.constant 0 : i32
    return %arg0, %c0_i32, %arg1 : i32, i32, i32
  }
  func.func @transform_1(%arg0: i32, %arg1: i32) -> (i32, i32) {
    %c0_i32 = arith.constant 0 : i32
    %c0_i32_0 = arith.constant 0 : i32
    %c0_i32_1 = arith.constant 0 : i32
    return %c0_i32, %c0_i32_0 : i32, i32
  }
  func.func @transform_2(%arg0: i32, %arg1: i32) -> (i32, i32) {
    %c0_i32 = arith.constant 0 : i32
    %c0_i32_0 = arith.constant 0 : i32
    %c0_i32_1 = arith.constant 0 : i32
    return %c0_i32, %c0_i32_0 : i32, i32
  }
  func.func @transform_3(%arg0: i32, %arg1: i32) -> (i32, i32) {
    %c0_i32 = arith.constant 0 : i32
    %c0_i32_0 = arith.constant 0 : i32
    %c0_i32_1 = arith.constant 0 : i32
    return %c0_i32, %c0_i32_0 : i32, i32
  }
  func.func @transform_4(%arg0: i32, %arg1: i32) -> (i32, i32, i32) {
    %c0_i32 = arith.constant 0 : i32
    %c0_i32_0 = arith.constant 0 : i32
    return %arg0, %c0_i32, %arg1 : i32, i32, i32
  }
}

</mosaic_0001>

<bundles_post_ra>
// kernel: tpu_custom_call.1
= control target key start
LH: loop header
LB: loop body
LE: loop exit
PB: predicated region body
PF: predicated region fallthrough
CT: control target
= control target key end

     0   :  { %9 = vsyncpa [#allocation3], 0  ;;  %s2266_s0 = inlined_call_operand.vmem [shape: bf16[2,9,256], index: 0, kind: input, shape index: {}]   ;;  %s2267_s1 = inlined_call_operand.vmem [shape: f32[16,4], index: 1, kind: input, shape index: {}]   ;;  %s2268_s2 = inlined_call_operand.vmem [shape: bf16[176,128], index: 2, kind: input, shape index: {}]   ;;  %s2269_s3 = inlined_call_operand.vmem [shape: bf16[192,176], index: 3, kind: input, shape index: {}]   ;;  %s2270_s4 = inlined_call_operand.hbm [shape: f32[2,64,256], index: 4, kind: output, shape index: {}]  }
   0x1   :  { %11 = vsyncpa [#allocation3 + $0x1], 0  ;;  %s1675_s15 = smov 0   ;;  %s1677_s16 = smov 0  }
   0x2   :  { %s1679_s17 = smov 0   ;;  %s1681_s18 = smov 0  }
   0x3   :  { %s1683_s19 = smov 0   ;;  %s1685_s20 = smov 0  }
   0x4 LB: > { %s1363_s21 = sadd.s32 4294967295, %s1640_s20   ;;  %s1364_s22 = sadd.s32 4294967294, %s1640_s20   ;;  %s1640_s20 = sphi %s1685_s20, %s17_s20   ;;  %s1636_s19 = sphi %s1683_s19, %s2296_s19   ;;  %s1632_s18 = sphi %s1681_s18, %s2295_s18   ;;  %s1628_s17 = sphi %s1679_s17, %s2294_s17   ;;  %s1624_s16 = sphi %s1677_s16, %s2293_s16   ;;  %s1620_s15 = sphi %s1675_s15, %s2292_s15  }
   0x5   : > { %s29_s23 = sadd.s32 1, %s1636_s19  ;;  %s129_s24 = sadd.s32 1, %s1628_s17 }
   0x6   : > { %p31_p0 = scmp.ge.s32.totalorder %s29_s23, 2  ;;  %p139_p1 = scmp.ne.s32.totalorder %s1628_s17, %s1624_s16 }
   0x7   : > { %p140_p2 = scmp.eq.s32.totalorder %s1363_s21, 1  ;;  %p145_p3 = scmp.ne.s32.totalorder %s1624_s16, %s1620_s15 }
   0x8   : > { %s2298_s23 = smov (%p31_p0, %s29_s23), 0  ;;  %p146_p5 = scmp.eq.s32.totalorder %s1364_s22, 1 }
   0x9   : > { %p1715_p4 = por %p140_p2, %p139_p1  ;;  %s124_s26 = ssub.s32 %s1636_s19, %s2298_s23 }
   0xa   : > { %p1367_p6 = scmp.ge.s32.totalorder %s1640_s20, 1  ;;  %p127_p7 = scmp.eq.s32.totalorder %s124_s26, 0 }
   0xb   : > { %p1722_p8 = por %p146_p5, %p145_p3  ;;  %p186_p9 = scmp.lt.s32.totalorder %s1640_s20, 3 }
   0xc   : > { %s1728_s28 = scalar_select %p127_p7, %s1628_s17, %s129_s24  }
   0xd   : > { %p187_p10 = pnand %p1367_p6, %p186_p9 }
   0xf   : > { %190 = sbr.rel (%p187_p10) target bundleno = 835 (0x343), region = 36 }
  0x16   : > { %v234_v0 = vld [vmem:[%s2267_s1] sm:$0xff]  ;;  %v1642_v1 = vmov 3   ;;  %v2271_v2 = vmov 0   ;;  %v235_v3 = vld [vmem:[%s2267_s1 + $0x8] sm:$0xff]  ;;  %v1644_v4 = vmov 1   ;;  %v1645_v5 = vmov 2  }
  0x17   : > { %1510 = vset.pattern.permute.xlu1 %v1642_v1  ;;  %1509 = vset.pattern.permute.xlu0 %v2271_v2  ;;  %p217_p11 = scmp.lt.s32.totalorder %s1632_s18, 1  ;;  %v246_v6 = vlaneseq  ;;  %vm982_vm0 = vcmask 392192   ;;  %s213_s26 = sand.u32 1, %s1624_s16  }
  0x18   : > { %259 = vperm.xlu1 %1510, %v234_v0   ;;  %238 = vperm.xlu0 %1509, %v234_v0   ;;  %s1368_s29 = sshll.u32 %s213_s26, 7  ;;  %s1424_s5 = sshll.u32 %s1632_s18, 11 }
  0x19   : > { %673 = vmatprep.mubr.bf16.mxu0 %v2271_v2  ;;  %s218_s7 = scalar_select %p217_p11, %s1632_s18, 1  ;;  %v247_v7 = vshrl.u32 %v246_v6, 7 }
  0x1a   : > { %s2177_s30 = scalar_lea.vmem [#allocation2], %s1368_s29  ;;  %s2210_s9 = scalar_lea.hbm %s2270_s4, %s1424_s5 }
  0x1b   : > { %s1423_s8 = sshll.u32 %s218_s7, 4  ;;  %v248_v10 = vsub.s32 0, %v247_v7  ;;  %v280_v11 = vsub.s32 1, %v247_v7  ;;  %v304_v12 = vsub.s32 2, %v247_v7  ;;  %v340_v15 = vsub.s32 3, %v247_v7  ;;  %s1284_s6 = sshll.u32 %s2177_s30, 4  ;;  %s2212_s6 = int_to_ptr.vmem [resolvable:$true] %s1284_s6 }
  0x1c   : > { %263 = vperm.xlu1 %1510, %v235_v3   ;;  %243 = vperm.xlu0 %1509, %v235_v3   ;;  %s224_s11 = scalar_lea.vmem %s2266_s0, %s1423_s8  ;;  %v376_v16 = vsub.s32 4, %v247_v7  ;;  %v412_v18 = vsub.s32 5, %v247_v7  ;;  %v448_v19 = vsub.s32 6, %v247_v7  ;;  %v484_v21 = vsub.s32 7, %v247_v7  ;;  %s2220_s18 = scalar_lea.sflag [#allocation3], %s213_s26 }
  0x1d   : > { %v228_v8 = vld [vmem:[%s224_s11] sm:$0xff]  ;;  %v229_v14 = vld [vmem:[%s224_s11 + $0x8] sm:$0x11]  ;;  %s1562_s10 = scalar_lea.vmem %s2212_s6, 2048  ;;  %s1647_s11 = smov [#allocation2]  }
  0x1e   : > { %v231_v9 = vunpack.c.h.bf16 %v228_v8  ;;  %v230_v13 = vunpack.c.l.bf16 %v228_v8  ;;  %v233_v22 = vunpack.c.h.bf16 %v229_v14  ;;  %v232_v23 = vunpack.c.l.bf16 %v229_v14  ;;  %p1563_p12 = scmp.ne.s32.totalorder %s2212_s6, %s1562_s10  ;;  %s1566_s12 = sshll.u32 %s1647_s11, 4  ;;  %s1567_s12 = int_to_ptr.vmem [resolvable:$false] %s1566_s12 }
  0x1f   : > { %s1568_s13 = scalar_lea.vmem %s1567_s12, 4096  ;;  %p1569_p1 = scmp.lt.s32.totalorder %s2212_s6, %s1567_s12 }
  0x20   : > { %1512 = vset.pattern.permute.xlu1 %v1644_v4  ;;  %1511 = vset.pattern.permute.xlu0 %v1644_v4  ;;  %v253_v17 = vrot.slane %v231_v9, %v248_v10  ;;  %v1743_v20 = vrot.slane %v231_v9, %v280_v11  ;;  %v1745_v24 = vrot.slane %v231_v9, %v304_v12  ;;  %p1564_p13 = pnand %p1563_p12, %p1715_p4  ;;  %p1570_p2 = scmp.lt.s32.totalorder %s1568_s13, %s1562_s10 }
  0x21   : > { %275 = vperm.xlu1 %1512, %v235_v3   ;;  %271 = vperm.xlu0 %1511, %v234_v0   ;;  %v249_v25 = vrot.slane %v230_v13, %v248_v10  ;;  %v281_v26 = vrot.slane %v230_v13, %v280_v11  ;;  %v1747_v27 = vrot.slane %v230_v13, %v304_v12 }
  0x22   : > { %v1749_v28 = vrot.slane %v231_v9, %v340_v15  ;;  %v1751_v29 = vrot.slane %v230_v13, %v340_v15  ;;  %v1753_v30 = vrot.slane %v231_v9, %v376_v16  ;;  %v1755_v31 = vrot.slane %v230_v13, %v376_v16  ;;  %p1565_p0 = pneg %p1564_p13  ;;  %p1571_p3 = por %p1570_p2, %p1569_p1 }
  0x23   : > { %v1757_v32 = vrot.slane %v231_v9, %v412_v18  ;;  %v1759_v33 = vrot.slane %v230_v13, %v412_v18  ;;  %v1761_v34 = vrot.slane %v231_v9, %v448_v19  ;;  %v1763_v35 = vrot.slane %v230_v13, %v448_v19 }
  0x24   : > { %v1769_v38 = vrot.slane %v231_v9, %v484_v21  ;;  %v1771_v39 = vrot.slane %v230_v13, %v484_v21  ;;  %v1773_v40 = vrot.slane %v233_v22, %v248_v10  ;;  %v1775_v41 = vrot.slane %v232_v23, %v248_v10  ;;  %p1572_p5 = pnand %p1571_p3, %p1565_p0 }
  0x25   : > { %1513 = vset.pattern.permute.xlu1 %v1645_v5  ;;  %1514 = vset.pattern.permute.xlu0 %v1645_v5 }
  0x26   : > { %295 = vperm.xlu1 %1513, %v234_v0   ;;  %299 = vperm.xlu0 %1514, %v235_v3   ;;  %2281 = vst [vmem:[#allocation5_spill] sm:$0xff] %v1769_v38  ;;  %2282 = vst [vmem:[#allocation6_spill] sm:$0xff] %v1771_v39 }
  0x27   : > { %2283 = vst [vmem:[#allocation7_spill] sm:$0xff] %v1773_v40  ;;  %2284 = vst [vmem:[#allocation8_spill] sm:$0xff] %v1775_v41 }
  0x97   : > { %v1765_v36 = vpop.permute.xlu1 %259  ;;  %v1767_v37 = vpop.permute.xlu0 %238 }
  0x98   : > { %v255_v42 = vmul.f32 %v253_v17, %v1767_v37  ;;  %v254_v43 = vmul.f32 %v249_v25, %v1767_v37  ;;  %v323_v44 = vmul.f32 %v1743_v20, %v1767_v37  ;;  %v322_v45 = vmul.f32 %v281_v26, %v1767_v37 }
  0x99   : > { %v359_v46 = vmul.f32 %v1745_v24, %v1767_v37  ;;  %v358_v47 = vmul.f32 %v1747_v27, %v1767_v37  ;;  %v395_v48 = vmul.f32 %v1749_v28, %v1767_v37  ;;  %v394_v49 = vmul.f32 %v1751_v29, %v1767_v37 }
  0x9a   : > { %v267_v50 = vadd.f32 %v1765_v36, %v255_v42  ;;  %v266_v51 = vadd.f32 %v1765_v36, %v254_v43  ;;  %v327_v52 = vadd.f32 %v323_v44, %v1765_v36  ;;  %v326_v53 = vadd.f32 %v322_v45, %v1765_v36 }
  0x9b   : > { %v1794_v54 = vpop.permute.xlu1 %263  ;;  %v1796_v55 = vpop.permute.xlu0 %243  ;;  %v1799_v56 = vadd.f32 %v359_v46, %v1765_v36  ;;  %v1802_v57 = vadd.f32 %v358_v47, %v1765_v36  ;;  %v1805_v58 = vadd.f32 %v395_v48, %v1765_v36  ;;  %v1808_v59 = vadd.f32 %v394_v49, %v1765_v36 }
  0x9c   : > { %2285 = vst [vmem:[#allocation9_spill] sm:$0xff] %v1796_v55  ;;  %v257_v60 = vmul.f32 %v253_v17, %v1796_v55  ;;  %v256_v61 = vmul.f32 %v249_v25, %v1796_v55  ;;  %v325_v62 = vmul.f32 %v1743_v20, %v1796_v55  ;;  %v324_v63 = vmul.f32 %v281_v26, %v1796_v55 }
  0x9d   : > { %v361_v0 = vmul.f32 %v1745_v24, %v1796_v55  ;;  %v360_v1 = vmul.f32 %v1747_v27, %v1796_v55  ;;  %v397_v3 = vmul.f32 %v1749_v28, %v1796_v55  ;;  %v396_v4 = vmul.f32 %v1751_v29, %v1796_v55 }
  0x9e   : > { %v269_v5 = vadd.f32 %v1794_v54, %v257_v60  ;;  %v268_v6 = vadd.f32 %v1794_v54, %v256_v61  ;;  %v329_v7 = vadd.f32 %v325_v62, %v1794_v54  ;;  %v328_v8 = vadd.f32 %v324_v63, %v1794_v54 }
  0x9f   : > { %v365_v9 = vadd.f32 %v361_v0, %v1794_v54  ;;  %v1829_v10 = vadd.f32 %v360_v1, %v1794_v54  ;;  %v1832_v11 = vadd.f32 %v397_v3, %v1794_v54  ;;  %v1835_v12 = vadd.f32 %v396_v4, %v1794_v54 }
  0xa0   : > { %v1837_v13 = vpop.permute.xlu1 %275  ;;  %v1839_v14 = vpop.permute.xlu0 %271  ;;  %v1843_v15 = vmul.f32 %v1753_v30, %v1767_v37  ;;  %v1847_v16 = vmul.f32 %v1753_v30, %v1796_v55  ;;  %v1851_v17 = vmul.f32 %v1755_v31, %v1767_v37  ;;  %v1855_v18 = vmul.f32 %v1755_v31, %v1796_v55 }
  0xa1   : > { %v287_v19 = vmul.f32 %v1743_v20, %v1839_v14  ;;  %v289_v21 = vmul.f32 %v1743_v20, %v1837_v13  ;;  %v286_v22 = vmul.f32 %v281_v26, %v1839_v14  ;;  %v288_v23 = vmul.f32 %v281_v26, %v1837_v13 }
  0xa2   : > { %v331_v25 = vmul.f32 %v1745_v24, %v1839_v14  ;;  %v333_v42 = vmul.f32 %v1745_v24, %v1837_v13  ;;  %v330_v43 = vmul.f32 %v1747_v27, %v1839_v14  ;;  %v332_v44 = vmul.f32 %v1747_v27, %v1837_v13 }
  0xa3   : > { %v291_v45 = vadd.f32 %v287_v19, %v267_v50  ;;  %v293_v46 = vadd.f32 %v289_v21, %v269_v5  ;;  %v290_v47 = vadd.f32 %v286_v22, %v266_v51  ;;  %v292_v20 = vadd.f32 %v288_v23, %v268_v6 }
  0xa4   : > { %v335_v48 = vadd.f32 %v331_v25, %v327_v52  ;;  %v337_v49 = vadd.f32 %v333_v42, %v329_v7  ;;  %v334_v60 = vadd.f32 %v330_v43, %v326_v53  ;;  %v336_v26 = vadd.f32 %v332_v44, %v328_v8 }
  0xa5   : > { %v1871_v61 = vpop.permute.xlu1 %295  ;;  %v1873_v62 = vpop.permute.xlu0 %299  ;;  %v367_v63 = vmul.f32 %v1749_v28, %v1839_v14  ;;  %v369_v0 = vmul.f32 %v1749_v28, %v1837_v13  ;;  %v366_v50 = vmul.f32 %v1751_v29, %v1839_v14  ;;  %v368_v51 = vmul.f32 %v1751_v29, %v1837_v13 }
  0xa6   : > { %v311_v52 = vmul.f32 %v1745_v24, %v1871_v61  ;;  %v313_v53 = vmul.f32 %v1745_v24, %v1873_v62  ;;  %v310_v1 = vmul.f32 %v1747_v27, %v1871_v61  ;;  %v312_v3 = vmul.f32 %v1747_v27, %v1873_v62 }
  0xa7   : > { %v347_v4 = vmul.f32 %v1749_v28, %v1871_v61  ;;  %v349_v5 = vmul.f32 %v1749_v28, %v1873_v62  ;;  %v346_v6 = vmul.f32 %v1751_v29, %v1871_v61  ;;  %v348_v7 = vmul.f32 %v1751_v29, %v1873_v62 }
  0xa8   : > { %v315_v8 = vadd.f32 %v311_v52, %v291_v45  ;;  %v317_v24 = vadd.f32 %v313_v53, %v293_v46  ;;  %v314_v19 = vadd.f32 %v310_v1, %v290_v47  ;;  %v316_v21 = vadd.f32 %v312_v3, %v292_v20 }
  0xa9   : > { %v351_v22 = vadd.f32 %v347_v4, %v335_v48  ;;  %v353_v23 = vadd.f32 %v349_v5, %v337_v49  ;;  %v350_v25 = vadd.f32 %v346_v6, %v334_v60  ;;  %v352_v27 = vadd.f32 %v348_v7, %v336_v26 }
  0xaa   : > { %v319_v42 = vmax.f32 %v315_v8, 0.0  ;;  %v321_v43 = vmax.f32 %v317_v24, 0.0  ;;  %v318_v44 = vmax.f32 %v314_v19, 0.0  ;;  %v320_v2 = vmax.f32 %v316_v21, 0.0 }
  0xab   : > { %v355_v41 = vmax.f32 %v351_v22, 0.0  ;;  %v357_v28 = vmax.f32 %v353_v23, 0.0  ;;  %v354_v40 = vmax.f32 %v350_v25, 0.0  ;;  %v356_v39 = vmax.f32 %v352_v27, 0.0 }
  0xac   : > { %v539_v38 = vpack.c.bf16 %v321_v43, %v319_v42  ;;  %v538_v55 = vpack.c.bf16 %v320_v2, %v318_v44  ;;  %v371_v29 = vadd.f32 %v367_v63, %v1799_v56  ;;  %v373_v45 = vadd.f32 %v369_v0, %v365_v9 }
  0xad   : > { %v541_v46 = vpack.c.bf16 %v357_v28, %v355_v41  ;;  %v540_v47 = vpack.c.bf16 %v356_v39, %v354_v40  ;;  %v383_v20 = vmul.f32 %v1753_v30, %v1871_v61  ;;  %v385_v48 = vmul.f32 %v1753_v30, %v1873_v62 }
  0xae   : > { %641 = vmatprep.subr.bf16.mxu0 %v539_v38  ;;  %v370_v49 = vadd.f32 %v366_v50, %v1802_v57  ;;  %v372_v60 = vadd.f32 %v368_v51, %v1829_v10  ;;  %v382_v26 = vmul.f32 %v1755_v31, %v1871_v61  ;;  %v384_v2 = vmul.f32 %v1755_v31, %v1873_v62 }
  0xaf   : > { %642 = vmatpush1.bf16.msra.mxu0 %v538_v55  ;;  %v387_v41 = vadd.f32 %v383_v20, %v371_v29  ;;  %v389_v39 = vadd.f32 %v385_v48, %v373_v45  ;;  %v403_v40 = vmul.f32 %v1753_v30, %v1839_v14  ;;  %v405_v56 = vmul.f32 %v1753_v30, %v1837_v13 }
  0xb0   : > { %643 = vmatprep.subr.bf16.mxu0 %v541_v46  ;;  %v386_v38 = vadd.f32 %v382_v26, %v370_v49  ;;  %v388_v57 = vadd.f32 %v384_v2, %v372_v60  ;;  %v419_v9 = vmul.f32 %v1757_v32, %v1871_v61  ;;  %v421_v10 = vmul.f32 %v1757_v32, %v1873_v62  ;;  %v2286_v26 = vld [vmem:[#allocation9_spill] sm:$0xff] }
  0xb1   : > { %v391_v63 = vmax.f32 %v387_v41, 0.0  ;;  %v393_v0 = vmax.f32 %v389_v39, 0.0  ;;  %v407_v55 = vadd.f32 %v403_v40, %v1805_v58  ;;  %v409_v50 = vadd.f32 %v405_v56, %v1832_v11 }
  0xb2   : > { %v390_v51 = vmax.f32 %v386_v38, 0.0  ;;  %v392_v52 = vmax.f32 %v388_v57, 0.0  ;;  %v402_v30 = vmul.f32 %v1755_v31, %v1839_v14  ;;  %v404_v53 = vmul.f32 %v1755_v31, %v1837_v13 }
  0xb3   : > { %644 = vmatpush1.bf16.msra.mxu0 %v540_v47  ;;  %v543_v1 = vpack.c.bf16 %v393_v0, %v391_v63  ;;  %v423_v3 = vadd.f32 %v419_v9, %v407_v55  ;;  %v425_v4 = vadd.f32 %v421_v10, %v409_v50  ;;  %v418_v5 = vmul.f32 %v1759_v33, %v1871_v61  ;;  %v2287_v0 = vld [vmem:[#allocation5_spill] sm:$0xff] }
  0xb4   : > { %v542_v6 = vpack.c.bf16 %v392_v52, %v390_v51  ;;  %v406_v58 = vadd.f32 %v402_v30, %v1808_v59  ;;  %v408_v11 = vadd.f32 %v404_v53, %v1835_v12  ;;  %v420_v7 = vmul.f32 %v1759_v33, %v1873_v62 }
  0xb5   : > { %645 = vmatprep.subr.bf16.mxu0 %v543_v1  ;;  %v427_v8 = vmax.f32 %v423_v3, 0.0  ;;  %v429_v24 = vmax.f32 %v425_v4, 0.0  ;;  %v435_v31 = vadd.f32 %v1843_v15, %v1765_v36  ;;  %v437_v19 = vadd.f32 %v1847_v16, %v1794_v54 }
  0xb6   : > { %v422_v21 = vadd.f32 %v418_v5, %v406_v58  ;;  %v424_v22 = vadd.f32 %v420_v7, %v408_v11  ;;  %v439_v23 = vmul.f32 %v1757_v32, %v1839_v14  ;;  %v441_v59 = vmul.f32 %v1757_v32, %v1837_v13  ;;  %v2288_v7 = vld [vmem:[#allocation6_spill] sm:$0xff] }
  0xb7   : > { %646 = vmatpush1.bf16.msra.mxu0 %v542_v6  ;;  %v545_v12 = vpack.c.bf16 %v429_v24, %v427_v8  ;;  %v455_v25 = vmul.f32 %v1761_v34, %v1871_v61  ;;  %v457_v27 = vmul.f32 %v1761_v34, %v1873_v62  ;;  %v434_v15 = vadd.f32 %v1851_v17, %v1765_v36 }
  0xb8   : > { %v426_v16 = vmax.f32 %v422_v21, 0.0  ;;  %v428_v42 = vmax.f32 %v424_v22, 0.0  ;;  %v443_v43 = vadd.f32 %v439_v23, %v435_v31  ;;  %v445_v44 = vadd.f32 %v441_v59, %v437_v19 }
  0xb9   : > { %647 = vmatprep.subr.bf16.mxu0 %v545_v12  ;;  %v436_v28 = vadd.f32 %v1855_v18, %v1794_v54  ;;  %v438_v29 = vmul.f32 %v1759_v33, %v1839_v14  ;;  %v440_v45 = vmul.f32 %v1759_v33, %v1837_v13  ;;  %v454_v46 = vmul.f32 %v1763_v35, %v1871_v61 }
  0xba   : > { %v544_v47 = vpack.c.bf16 %v428_v42, %v426_v16  ;;  %v459_v20 = vadd.f32 %v455_v25, %v443_v43  ;;  %v461_v17 = vadd.f32 %v457_v27, %v445_v44  ;;  %v456_v48 = vmul.f32 %v1763_v35, %v1873_v62  ;;  %v2289_v43 = vld [vmem:[#allocation7_spill] sm:$0xff] }
  0xbb   : > { %v442_v49 = vadd.f32 %v438_v29, %v434_v15  ;;  %v444_v60 = vadd.f32 %v440_v45, %v436_v28  ;;  %v467_v18 = vmul.f32 %v1757_v32, %v1767_v37  ;;  %v469_v2 = vmul.f32 %v1757_v32, %v2286_v26 }
  0xbc   : > { %648 = vmatpush1.bf16.msra.mxu0 %v544_v47  ;;  %v463_v41 = vmax.f32 %v459_v20, 0.0  ;;  %v465_v39 = vmax.f32 %v461_v17, 0.0  ;;  %v475_v40 = vmul.f32 %v1761_v34, %v1839_v14  ;;  %v477_v56 = vmul.f32 %v1761_v34, %v1837_v13 }
  0xbd   : > { %v458_v38 = vadd.f32 %v454_v46, %v442_v49  ;;  %v460_v57 = vadd.f32 %v456_v48, %v444_v60  ;;  %v471_v9 = vadd.f32 %v467_v18, %v1765_v36  ;;  %v473_v10 = vadd.f32 %v469_v2, %v1794_v54  ;;  %v2290_v2 = vld [vmem:[#allocation8_spill] sm:$0xff] }
  0xbe   : > { %v547_v63 = vpack.c.bf16 %v465_v39, %v463_v41  ;;  %v491_v55 = vmul.f32 %v2287_v0, %v1871_v61  ;;  %v493_v32 = vmul.f32 %v2287_v0, %v1873_v62  ;;  %v466_v50 = vmul.f32 %v1759_v33, %v1767_v37 }
  0xbf   : > { %v462_v51 = vmax.f32 %v458_v38, 0.0  ;;  %v464_v52 = vmax.f32 %v460_v57, 0.0  ;;  %v479_v30 = vadd.f32 %v475_v40, %v471_v9  ;;  %v481_v53 = vadd.f32 %v477_v56, %v473_v10 }
  0xc0   : > { %649 = vmatprep.subr.bf16.mxu0 %v547_v63  ;;  %v468_v1 = vmul.f32 %v1759_v33, %v2286_v26  ;;  %v470_v3 = vadd.f32 %v466_v50, %v1765_v36  ;;  %v474_v4 = vmul.f32 %v1763_v35, %v1839_v14  ;;  %v476_v5 = vmul.f32 %v1763_v35, %v1837_v13  ;;  %v1519_v50 = vld [vmem:[%s2268_s2 + $0x20] sm:$0xff]  }
  0xc1   : > { %v546_v6 = vpack.c.bf16 %v464_v52, %v462_v51  ;;  %v495_v58 = vadd.f32 %v491_v55, %v479_v30  ;;  %v497_v11 = vadd.f32 %v493_v32, %v481_v53  ;;  %v490_v8 = vmul.f32 %v2288_v7, %v1871_v61  ;;  %v1517_v55 = vld [vmem:[%s2268_s2 + $0x10] sm:$0xff]   ;;  %v1518_v32 = vld [vmem:[%s2268_s2 + $0x18] sm:$0xff]   ;;  %v1520_v51 = vld [vmem:[%s2268_s2 + $0x28] sm:$0xff]  }
  0xc2   : > { %v472_v24 = vadd.f32 %v468_v1, %v1794_v54  ;;  %v478_v31 = vadd.f32 %v474_v4, %v470_v3  ;;  %v492_v33 = vmul.f32 %v2288_v7, %v1873_v62  ;;  %v503_v19 = vmul.f32 %v1761_v34, %v1767_v37  ;;  %v1521_v52 = vld [vmem:[%s2268_s2 + $0x30] sm:$0xff]   ;;  %v1522_v30 = vld [vmem:[%s2268_s2 + $0x38] sm:$0xff]   ;;  %v1523_v53 = vld [vmem:[%s2268_s2 + $0x40] sm:$0xff]  }
  0xc3   : > { %650 = vmatpush1.bf16.msra.mxu0 %v546_v6  ;;  %v499_v21 = vmax.f32 %v495_v58, 0.0  ;;  %v501_v22 = vmax.f32 %v497_v11, 0.0  ;;  %v505_v23 = vmul.f32 %v1761_v34, %v2286_v26  ;;  %v511_v59 = vmul.f32 %v2287_v0, %v1839_v14  ;;  %v1524_v1 = vld [vmem:[%s2268_s2 + $0x48] sm:$0xff]   ;;  %v1525_v3 = vld [vmem:[%s2268_s2 + $0x50] sm:$0xff]  }
  0xc4   : > { %v480_v12 = vadd.f32 %v476_v5, %v472_v24  ;;  %v494_v25 = vadd.f32 %v490_v8, %v478_v31  ;;  %v507_v27 = vadd.f32 %v503_v19, %v1765_v36  ;;  %v513_v15 = vmul.f32 %v2287_v0, %v1837_v13  ;;  %v1516_v0 = vld [vmem:[%s2268_s2 + $0x8] sm:$0xff]   ;;  %v1528_v4 = vld [vmem:[%s2269_s3 + $0x14] ss:$8 sps:$4 sm:$0xff]  }
  0xc5   : > { %v549_v16 = vpack.c.bf16 %v501_v22, %v499_v21  ;;  %v509_v42 = vadd.f32 %v505_v23, %v1794_v54  ;;  %v527_v44 = vmul.f32 %v2289_v43, %v1871_v61  ;;  %v529_v28 = vmul.f32 %v2289_v43, %v1873_v62  ;;  %1407 = vmatprep.mubr.msk.bf16.mxu1 %vm982_vm0, %v1528_v4  ;;  %v1537_v5 = vld [vmem:[%s2269_s3 + $0x4] ss:$8 sps:$4 sm:$0xff]  }
  0xc6   : > { %v496_v34 = vadd.f32 %v492_v33, %v480_v12  ;;  %v498_v29 = vmax.f32 %v494_v25, 0.0  ;;  %v515_v45 = vadd.f32 %v511_v59, %v507_v27  ;;  %v502_v46 = vmul.f32 %v1763_v35, %v1767_v37 }
  0xc7   : > { %651 = vmatprep.subr.bf16.mxu0 %v549_v16  ;;  %v517_v47 = vadd.f32 %v513_v15, %v509_v42  ;;  %v504_v20 = vmul.f32 %v1763_v35, %v2286_v26  ;;  %v510_v17 = vmul.f32 %v2288_v7, %v1839_v14  ;;  %v512_v48 = vmul.f32 %v2288_v7, %v1837_v13 }
  0xc8   : > { %v500_v49 = vmax.f32 %v496_v34, 0.0  ;;  %v531_v60 = vadd.f32 %v527_v44, %v515_v45  ;;  %v506_v18 = vadd.f32 %v502_v46, %v1765_v36  ;;  %v526_v41 = vmul.f32 %v2290_v2, %v1871_v61 }
  0xc9   : > { %v533_v39 = vadd.f32 %v529_v28, %v517_v47  ;;  %v508_v37 = vadd.f32 %v504_v20, %v1794_v54  ;;  %v528_v40 = vmul.f32 %v2290_v2, %v1873_v62  ;;  %v1646_v61 = vmov 1.0|1.0   ;;  %v1515_v54 = vld [vmem:[%s2268_s2] sm:$0xff]  }
  0xca   : > { %v548_v35 = vpack.c.bf16 %v500_v49, %v498_v29  ;;  %v535_v26 = vmax.f32 %v531_v60, 0.0  ;;  %v514_v56 = vadd.f32 %v510_v17, %v506_v18  ;;  %v2291_v62 = vmov 0  }
  0xcb   : > { %v537_v14 = vmax.f32 %v533_v39, 0.0  ;;  %v516_v38 = vadd.f32 %v512_v48, %v508_v37 }
  0xcc   : > { %652 = vmatpush1.bf16.msra.mxu0 %v548_v35  ;;  %v530_v13 = vadd.f32 %v526_v41, %v514_v56 }
  0xcd   : > { %v551_v57 = vpack.c.bf16 %v537_v14, %v535_v26  ;;  %v532_v9 = vadd.f32 %v528_v40, %v516_v38 }
  0xce   : > { %v534_v10 = vmax.f32 %v530_v13, 0.0 }
  0xcf   : > { %653 = vmatprep.subr.bf16.mxu0 %v551_v57  ;;  %v536_v36 = vmax.f32 %v532_v9, 0.0 }
  0xd1   : > { %v550_v63 = vpack.c.bf16 %v536_v36, %v534_v10 }
  0xd3   : > { %654 = vmatpush1.bf16.msra.mxu0 %v550_v63 }
  0xd4   : > { %655 = vmatprep.subr.bf16.mxu0 %v1646_v61 }
  0xd7   : > { %656 = vmatpush1.bf16.msra.mxu0 %v1646_v61 }
  0xda   : > { %674 = vmatmul.mubr.bf16.vlgmr.msra.gmra.mrb[0].mxu0 %v1515_v54 }
  0xdb   : > { %683 = vmatprep.mubr.bf16.mxu0 %v2291_v62 }
  0xe2   : > { %684 = vmatmul.mubr.bf16.gmra.mrb[4].mxu0 %v1516_v0 }
  0xe3   : > { %693 = vmatprep.mubr.bf16.mxu0 %v2291_v62 }
  0xea   : > { %694 = vmatmul.mubr.bf16.gmra.mrb[8].mxu0 %v1517_v55 }
  0xeb   : > { %703 = vmatprep.mubr.bf16.mxu0 %v2291_v62 }
  0xf2   : > { %704 = vmatmul.mubr.bf16.gmra.mrb[12].mxu0 %v1518_v32 }
  0xf3   : > { %713 = vmatprep.mubr.bf16.mxu0 %v2291_v62 }
  0xfa   : > { %714 = vmatmul.mubr.bf16.gmra.mrb[16].mxu0 %v1519_v50 }
  0xfb   : > { %723 = vmatprep.mubr.bf16.mxu0 %v2291_v62 }
 0x102   : > { %724 = vmatmul.mubr.bf16.gmra.mrb[20].mxu0 %v1520_v51 }
 0x103   : > { %733 = vmatprep.mubr.bf16.mxu0 %v2291_v62 }
 0x10a   : > { %734 = vmatmul.mubr.bf16.gmra.mrb[24].mxu0 %v1521_v52 }
 0x10b   : > { %743 = vmatprep.mubr.bf16.mxu0 %v2291_v62 }
 0x112   : > { %744 = vmatmul.mubr.bf16.gmra.mrb[28].mxu0 %v1522_v30 }
 0x113   : > { %753 = vmatprep.mubr.bf16.mxu0 %v2291_v62 }
 0x11a   : > { %754 = vmatmul.mubr.bf16.gmra.mrb[32].mxu0 %v1523_v53 }
 0x11b   : > { %763 = vmatprep.mubr.bf16.mxu0 %v2291_v62 }
 0x122   : > { %764 = vmatmul.mubr.bf16.gmra.mrb[36].mxu0 %v1524_v1 }
 0x123   : > { %773 = vmatprep.mubr.bf16.mxu0 %v2291_v62 }
 0x12a   : > { %774 = vmatmul.mubr.bf16.gmra.mrb[40].mxu0 %v1525_v3 }
 0x12b   : > { %1406 = vmatprep.mubr.msk.bf16.mxu0 %vm982_vm0, %v1537_v5 }
 0x1ad   : > { %v675_v6 = vpop.f32.mrb[0].mxu0 }
 0x1ae   : > { %v677_v58 = vpop.f32.mrb[1].mxu0  ;;  %v784_v7 = vmax.f32 %v675_v6, 0.0 }
 0x1af   : > { %v679_v11 = vpop.f32.mrb[2].mxu0  ;;  %v785_v31 = vmax.f32 %v677_v58, 0.0 }
 0x1b0   : > { %v786_v8 = vmax.f32 %v679_v11, 0.0  ;;  %v681_v24 = vpop.f32.mrb[3].mxu0 }
 0x1b1   : > { %v787_v33 = vmax.f32 %v681_v24, 0.0 }
 0x1b2   : > { %v828_v19 = vpack.c.bf16 %v786_v8, %v784_v7 }
 0x1b3   : > { %v829_v21 = vpack.c.bf16 %v787_v33, %v785_v31 }
 0x1b5   : > { %v685_v22 = vpop.f32.mrb[4].mxu0  ;;  %1019 = vmatprep.subr.bf16.mxu0 %v829_v21  ;;  %1425 = vmatprep.subr.bf16.mxu1 %v829_v21 }
 0x1b6   : > { %v687_v23 = vpop.f32.mrb[5].mxu0  ;;  %1020 = vmatpush1.bf16.msra.mxu0 %v828_v19  ;;  %1436 = vmatpush1.bf16.msra.mxu1 %v828_v19  ;;  %v788_v12 = vmax.f32 %v685_v22, 0.0 }
 0x1b7   : > { %v689_v59 = vpop.f32.mrb[6].mxu0  ;;  %v789_v15 = vmax.f32 %v687_v23, 0.0 }
 0x1b8   : > { %v790_v25 = vmax.f32 %v689_v59, 0.0  ;;  %v691_v27 = vpop.f32.mrb[7].mxu0 }
 0x1b9   : > { %v791_v16 = vmax.f32 %v691_v27, 0.0 }
 0x1ba   : > { %v830_v42 = vpack.c.bf16 %v790_v25, %v788_v12 }
 0x1bb   : > { %v831_v43 = vpack.c.bf16 %v791_v16, %v789_v15 }
 0x1bd   : > { %v695_v44 = vpop.f32.mrb[8].mxu0  ;;  %1021 = vmatprep.subr.bf16.mxu0 %v831_v43  ;;  %1426 = vmatprep.subr.bf16.mxu1 %v831_v43 }
 0x1be   : > { %v697_v28 = vpop.f32.mrb[9].mxu0  ;;  %1022 = vmatpush1.bf16.msra.mxu0 %v830_v42  ;;  %1437 = vmatpush1.bf16.msra.mxu1 %v830_v42  ;;  %v792_v29 = vmax.f32 %v695_v44, 0.0 }
 0x1bf   : > { %v699_v34 = vpop.f32.mrb[10].mxu0  ;;  %v793_v47 = vmax.f32 %v697_v28, 0.0 }
 0x1c0   : > { %v794_v45 = vmax.f32 %v699_v34, 0.0  ;;  %v701_v46 = vpop.f32.mrb[11].mxu0 }
 0x1c1   : > { %v795_v20 = vmax.f32 %v701_v46, 0.0 }
 0x1c2   : > { %v832_v17 = vpack.c.bf16 %v794_v45, %v792_v29 }
 0x1c3   : > { %v833_v48 = vpack.c.bf16 %v795_v20, %v793_v47 }
 0x1c5   : > { %v705_v49 = vpop.f32.mrb[12].mxu0  ;;  %1023 = vmatprep.subr.bf16.mxu0 %v833_v48  ;;  %1427 = vmatprep.subr.bf16.mxu1 %v833_v48 }
 0x1c6   : > { %v707_v60 = vpop.f32.mrb[13].mxu0  ;;  %1024 = vmatpush1.bf16.msra.mxu0 %v832_v17  ;;  %1438 = vmatpush1.bf16.msra.mxu1 %v832_v17  ;;  %v796_v2 = vmax.f32 %v705_v49, 0.0 }
 0x1c7   : > { %v709_v18 = vpop.f32.mrb[14].mxu0  ;;  %v797_v37 = vmax.f32 %v707_v60, 0.0 }
 0x1c8   : > { %v798_v41 = vmax.f32 %v709_v18, 0.0  ;;  %v711_v39 = vpop.f32.mrb[15].mxu0 }
 0x1c9   : > { %v799_v40 = vmax.f32 %v711_v39, 0.0 }
 0x1ca   : > { %v834_v35 = vpack.c.bf16 %v798_v41, %v796_v2 }
 0x1cb   : > { %v835_v26 = vpack.c.bf16 %v799_v40, %v797_v37 }
 0x1cd   : > { %v715_v56 = vpop.f32.mrb[16].mxu0  ;;  %1025 = vmatprep.subr.bf16.mxu0 %v835_v26  ;;  %1428 = vmatprep.subr.bf16.mxu1 %v835_v26 }
 0x1ce   : > { %v717_v14 = vpop.f32.mrb[17].mxu0  ;;  %1026 = vmatpush1.bf16.msra.mxu0 %v834_v35  ;;  %1439 = vmatpush1.bf16.msra.mxu1 %v834_v35  ;;  %v800_v13 = vmax.f32 %v715_v56, 0.0 }
 0x1cf   : > { %v719_v38 = vpop.f32.mrb[18].mxu0  ;;  %v801_v10 = vmax.f32 %v717_v14, 0.0 }
 0x1d0   : > { %v802_v57 = vmax.f32 %v719_v38, 0.0  ;;  %v721_v9 = vpop.f32.mrb[19].mxu0 }
 0x1d1   : > { %v803_v36 = vmax.f32 %v721_v9, 0.0 }
 0x1d2   : > { %v836_v63 = vpack.c.bf16 %v802_v57, %v800_v13 }
 0x1d3   : > { %v837_v61 = vpack.c.bf16 %v803_v36, %v801_v10  ;;  %v1526_v10 = vld [vmem:[%s2269_s3 + $0x10] ss:$8 sps:$4 sm:$0xff]   ;;  %v1535_v36 = vld [vmem:[%s2269_s3] ss:$8 sps:$4 sm:$0xff]  }
 0x1d5   : > { %v725_v54 = vpop.f32.mrb[20].mxu0  ;;  %1027 = vmatprep.subr.bf16.mxu0 %v837_v61  ;;  %1429 = vmatprep.subr.bf16.mxu1 %v837_v61  ;;  %v1531_v61 = vld [vmem:[%s2269_s3 + $0x20] ss:$8 sps:$4 sm:$0xff]  }
 0x1d6   : > { %v727_v62 = vpop.f32.mrb[21].mxu0  ;;  %1028 = vmatpush1.bf16.msra.mxu0 %v836_v63  ;;  %1440 = vmatpush1.bf16.msra.mxu1 %v836_v63  ;;  %v804_v55 = vmax.f32 %v725_v54, 0.0  ;;  %v1529_v63 = vld [vmem:[%s2269_s3 + $0x24] ss:$8 sps:$4 sm:$0xff]   ;;  %v1532_v54 = vld [vmem:[%s2269_s3 + $0x34] ss:$8 sps:$4 sm:$0xff]  }
 0x1d7   : > { %v729_v0 = vpop.f32.mrb[22].mxu0  ;;  %v805_v51 = vmax.f32 %v727_v62, 0.0  ;;  %v1534_v62 = vld [vmem:[%s2269_s3 + $0x30] ss:$8 sps:$4 sm:$0xff]  }
 0x1d8   : > { %v806_v32 = vmax.f32 %v729_v0, 0.0  ;;  %v731_v50 = vpop.f32.mrb[23].mxu0  ;;  %v1538_v0 = vld [vmem:[%s2269_s3 + $0x44] ss:$8 sps:$4 sm:$0xff]  }
 0x1d9   : > { %v807_v52 = vmax.f32 %v731_v50, 0.0  ;;  %v1543_v50 = vld [vmem:[%s2269_s3 + $0x50] ss:$8 sps:$4 sm:$0xff]  }
 0x1da   : > { %v838_v30 = vpack.c.bf16 %v806_v32, %v804_v55  ;;  %v1540_v55 = vld [vmem:[%s2269_s3 + $0x40] ss:$8 sps:$4 sm:$0xff]   ;;  %v1541_v32 = vld [vmem:[%s2269_s3 + $0x54] ss:$8 sps:$4 sm:$0xff]  }
 0x1db   : > { %v839_v53 = vpack.c.bf16 %v807_v52, %v805_v51  ;;  %v1544_v51 = vld [vmem:[%s2269_s3 + $0x64] ss:$8 sps:$4 sm:$0xff]   ;;  %v1546_v52 = vld [vmem:[%s2269_s3 + $0x60] ss:$8 sps:$4 sm:$0xff]  }
 0x1dd   : > { %v735_v1 = vpop.f32.mrb[24].mxu0  ;;  %1029 = vmatprep.subr.bf16.mxu0 %v839_v53  ;;  %1430 = vmatprep.subr.bf16.mxu1 %v839_v53  ;;  %v1549_v53 = vld [vmem:[%s2269_s3 + $0x70] ss:$8 sps:$4 sm:$0xff]  }
 0x1de   : > { %v737_v3 = vpop.f32.mrb[25].mxu0  ;;  %1030 = vmatpush1.bf16.msra.mxu0 %v838_v30  ;;  %1441 = vmatpush1.bf16.msra.mxu1 %v838_v30  ;;  %v808_v5 = vmax.f32 %v735_v1, 0.0  ;;  %v1547_v30 = vld [vmem:[%s2269_s3 + $0x74] ss:$8 sps:$4 sm:$0xff]   ;;  %v1550_v1 = vld [vmem:[%s2269_s3 + $0x84] ss:$8 sps:$4 sm:$0xff]  }
 0x1df   : > { %v739_v4 = vpop.f32.mrb[26].mxu0  ;;  %v809_v11 = vmax.f32 %v737_v3, 0.0  ;;  %v1552_v3 = vld [vmem:[%s2269_s3 + $0x80] ss:$8 sps:$4 sm:$0xff]  }
 0x1e0   : > { %v810_v6 = vmax.f32 %v739_v4, 0.0  ;;  %v741_v58 = vpop.f32.mrb[27].mxu0  ;;  %v1553_v4 = vld [vmem:[%s2269_s3 + $0x94] ss:$8 sps:$4 sm:$0xff]  }
 0x1e1   : > { %v811_v7 = vmax.f32 %v741_v58, 0.0  ;;  %v1558_v58 = vld [vmem:[%s2269_s3 + $0xa0] ss:$8 sps:$4 sm:$0xff]  }
 0x1e2   : > { %v840_v8 = vpack.c.bf16 %v810_v6, %v808_v5  ;;  %v1555_v5 = vld [vmem:[%s2269_s3 + $0x90] ss:$8 sps:$4 sm:$0xff]   ;;  %v1556_v6 = vld [vmem:[%s2269_s3 + $0xa4] ss:$8 sps:$4 sm:$0xff]  }
 0x1e3   : > { %v841_v24 = vpack.c.bf16 %v811_v7, %v809_v11  ;;  %v1559_v11 = vld [vmem:[%s2269_s3 + $0xb4] ss:$8 sps:$4 sm:$0xff]   ;;  %v1561_v7 = vld [vmem:[%s2269_s3 + $0xb0] ss:$8 sps:$4 sm:$0xff]  }
 0x1e5   : > { %v745_v31 = vpop.f32.mrb[28].mxu0  ;;  %1031 = vmatprep.subr.bf16.mxu0 %v841_v24  ;;  %1431 = vmatprep.subr.bf16.mxu1 %v841_v24 }
 0x1e6   : > { %v747_v33 = vpop.f32.mrb[29].mxu0  ;;  %1032 = vmatpush1.bf16.msra.mxu0 %v840_v8  ;;  %1442 = vmatpush1.bf16.msra.mxu1 %v840_v8  ;;  %v812_v21 = vmax.f32 %v745_v31, 0.0 }
 0x1e7   : > { %v749_v19 = vpop.f32.mrb[30].mxu0  ;;  %v813_v59 = vmax.f32 %v747_v33, 0.0 }
 0x1e8   : > { %v814_v22 = vmax.f32 %v749_v19, 0.0  ;;  %v751_v23 = vpop.f32.mrb[31].mxu0 }
 0x1e9   : > { %v815_v12 = vmax.f32 %v751_v23, 0.0 }
 0x1ea   : > { %v842_v25 = vpack.c.bf16 %v814_v22, %v812_v21 }
 0x1eb   : > { %v843_v27 = vpack.c.bf16 %v815_v12, %v813_v59 }
 0x1ed   : > { %v755_v15 = vpop.f32.mrb[32].mxu0  ;;  %1033 = vmatprep.subr.bf16.mxu0 %v843_v27  ;;  %1432 = vmatprep.subr.bf16.mxu1 %v843_v27 }
 0x1ee   : > { %v757_v16 = vpop.f32.mrb[33].mxu0  ;;  %1034 = vmatpush1.bf16.msra.mxu0 %v842_v25  ;;  %1443 = vmatpush1.bf16.msra.mxu1 %v842_v25  ;;  %v816_v43 = vmax.f32 %v755_v15, 0.0 }
 0x1ef   : > { %v759_v42 = vpop.f32.mrb[34].mxu0  ;;  %v817_v34 = vmax.f32 %v757_v16, 0.0 }
 0x1f0   : > { %v818_v44 = vmax.f32 %v759_v42, 0.0  ;;  %v761_v28 = vpop.f32.mrb[35].mxu0 }
 0x1f1   : > { %v819_v29 = vmax.f32 %v761_v28, 0.0 }
 0x1f2   : > { %v844_v45 = vpack.c.bf16 %v818_v44, %v816_v43 }
 0x1f3   : > { %v845_v46 = vpack.c.bf16 %v819_v29, %v817_v34 }
 0x1f5   : > { %v765_v47 = vpop.f32.mrb[36].mxu0  ;;  %1035 = vmatprep.subr.bf16.mxu0 %v845_v46  ;;  %1433 = vmatprep.subr.bf16.mxu1 %v845_v46 }
 0x1f6   : > { %v767_v20 = vpop.f32.mrb[37].mxu0  ;;  %1036 = vmatpush1.bf16.msra.mxu0 %v844_v45  ;;  %1444 = vmatpush1.bf16.msra.mxu1 %v844_v45  ;;  %v820_v48 = vmax.f32 %v765_v47, 0.0 }
 0x1f7   : > { %v769_v17 = vpop.f32.mrb[38].mxu0  ;;  %v821_v18 = vmax.f32 %v767_v20, 0.0 }
 0x1f8   : > { %v822_v49 = vmax.f32 %v769_v17, 0.0  ;;  %v771_v60 = vpop.f32.mrb[39].mxu0 }
 0x1f9   : > { %v823_v2 = vmax.f32 %v771_v60, 0.0 }
 0x1fa   : > { %v846_v41 = vpack.c.bf16 %v822_v49, %v820_v48 }
 0x1fb   : > { %v847_v39 = vpack.c.bf16 %v823_v2, %v821_v18 }
 0x1fd   : > { %v775_v37 = vpop.f32.mrb[40].mxu0  ;;  %1037 = vmatprep.subr.bf16.mxu0 %v847_v39  ;;  %1434 = vmatprep.subr.bf16.mxu1 %v847_v39 }
 0x1fe   : > { %v777_v40 = vpop.f32.mrb[41].mxu0  ;;  %1038 = vmatpush1.bf16.msra.mxu0 %v846_v41  ;;  %1445 = vmatpush1.bf16.msra.mxu1 %v846_v41  ;;  %v824_v26 = vmax.f32 %v775_v37, 0.0 }
 0x1ff   : > { %v779_v35 = vpop.f32.mrb[42].mxu0  ;;  %v825_v38 = vmax.f32 %v777_v40, 0.0 }
 0x200   : > { %v826_v56 = vmax.f32 %v779_v35, 0.0  ;;  %v781_v14 = vpop.f32.mrb[43].mxu0 }
 0x201   : > { %v827_v13 = vmax.f32 %v781_v14, 0.0 }
 0x202   : > { %v848_v57 = vpack.c.bf16 %v826_v56, %v824_v26 }
 0x203   : > { %v849_v9 = vpack.c.bf16 %v827_v13, %v825_v38 }
 0x205   : > { %1039 = vmatprep.subr.bf16.mxu0 %v849_v9  ;;  %1435 = vmatprep.subr.bf16.mxu1 %v849_v9 }
 0x206   : > { %1040 = vmatpush1.bf16.msra.mxu0 %v848_v57  ;;  %1446 = vmatpush1.bf16.msra.mxu1 %v848_v57 }
 0x209   : > { %1062 = vmatmul.mubr.bf16.vlgmr.msra.gmra.mrb[0].mxu1 %v1526_v10  ;;  %1052 = vmatmul.mubr.bf16.vlgmr.msra.gmra.mrb[44].mxu0 %v1535_v36 }
 0x20a   : > { %1408 = vmatprep.mubr.msk.bf16.mxu1 %vm982_vm0, %v1529_v63 }
 0x211   : > { %1072 = vmatmul.mubr.bf16.gmra.mrb[4].mxu1 %v1531_v61 }
 0x212   : > { %1409 = vmatprep.mubr.msk.bf16.mxu1 %vm982_vm0, %v1532_v54 }
 0x219   : > { %1082 = vmatmul.mubr.bf16.gmra.mrb[8].mxu1 %v1534_v62 }
 0x21a   : > { %1410 = vmatprep.mubr.msk.bf16.mxu1 %vm982_vm0, %v1538_v0 }
 0x221   : > { %1092 = vmatmul.mubr.bf16.gmra.mrb[12].mxu1 %v1540_v55 }
 0x222   : > { %1411 = vmatprep.mubr.msk.bf16.mxu1 %vm982_vm0, %v1541_v32 }
 0x229   : > { %1102 = vmatmul.mubr.bf16.gmra.mrb[16].mxu1 %v1543_v50 }
 0x22a   : > { %1412 = vmatprep.mubr.msk.bf16.mxu1 %vm982_vm0, %v1544_v51 }
 0x231   : > { %1112 = vmatmul.mubr.bf16.gmra.mrb[20].mxu1 %v1546_v52 }
 0x232   : > { %1413 = vmatprep.mubr.msk.bf16.mxu1 %vm982_vm0, %v1547_v30 }
 0x239   : > { %1122 = vmatmul.mubr.bf16.gmra.mrb[24].mxu1 %v1549_v53 }
 0x23a   : > { %1414 = vmatprep.mubr.msk.bf16.mxu1 %vm982_vm0, %v1550_v1 }
 0x241   : > { %1132 = vmatmul.mubr.bf16.gmra.mrb[28].mxu1 %v1552_v3 }
 0x242   : > { %1415 = vmatprep.mubr.msk.bf16.mxu1 %vm982_vm0, %v1553_v4 }
 0x249   : > { %1142 = vmatmul.mubr.bf16.gmra.mrb[32].mxu1 %v1555_v5 }
 0x24a   : > { %1416 = vmatprep.mubr.msk.bf16.mxu1 %vm982_vm0, %v1556_v6 }
 0x251   : > { %1152 = vmatmul.mubr.bf16.gmra.mrb[36].mxu1 %v1558_v58 }
 0x252   : > { %1417 = vmatprep.mubr.msk.bf16.mxu1 %vm982_vm0, %v1559_v11 }
 0x259   : > { %1162 = vmatmul.mubr.bf16.gmra.mrb[40].mxu1 %v1561_v7 }
 0x2dc   : > { %v1063_v8 = vpop.f32.mrb[0].mxu1  ;;  %v1053_v24 = vpop.f32.mrb[44].mxu0 }
 0x2dd   : > { %v1065_v31 = vpop.f32.mrb[1].mxu1  ;;  %v1055_v33 = vpop.f32.mrb[45].mxu0  ;;  %v1172_v44 = vmax.f32 %v1053_v24, 0.0  ;;  %v1176_v40 = vmax.f32 %v1063_v8, 0.0 }
 0x2de   : > { %v1067_v19 = vpop.f32.mrb[2].mxu1  ;;  %v1057_v21 = vpop.f32.mrb[46].mxu0  ;;  %v1173_v34 = vmax.f32 %v1055_v33, 0.0  ;;  %v1177_v56 = vmax.f32 %v1065_v31, 0.0 }
 0x2df   : > { %v1069_v22 = vpop.f32.mrb[3].mxu1  ;;  %v1059_v23 = vpop.f32.mrb[47].mxu0  ;;  %v1174_v46 = vmax.f32 %v1057_v21, 0.0  ;;  %v1178_v13 = vmax.f32 %v1067_v19, 0.0 }
 0x2e0   : > { %v1175_v17 = vmax.f32 %v1059_v23, 0.0  ;;  %v1179_v36 = vmax.f32 %v1069_v22, 0.0 }
 0x2e4   : > { %v1073_v59 = vpop.f32.mrb[4].mxu1 }
 0x2e5   : > { %v1075_v12 = vpop.f32.mrb[5].mxu1  ;;  %v1180_v55 = vmax.f32 %v1073_v59, 0.0 }
 0x2e6   : > { %v1077_v25 = vpop.f32.mrb[6].mxu1  ;;  %v1181_v51 = vmax.f32 %v1075_v12, 0.0 }
 0x2e7   : > { %v1079_v27 = vpop.f32.mrb[7].mxu1  ;;  %v1182_v53 = vmax.f32 %v1077_v25, 0.0 }
 0x2e8   : > { %v1183_v5 = vmax.f32 %v1079_v27, 0.0 }
 0x2ec   : > { %v1083_v15 = vpop.f32.mrb[8].mxu1 }
 0x2ed   : > { %v2137_v16 = vpop.f32.mrb[9].mxu1  ;;  %v1184_v24 = vmax.f32 %v1083_v15, 0.0 }
 0x2ee   : > { %v2139_v42 = vpop.f32.mrb[10].mxu1  ;;  %v1185_v19 = vmax.f32 %v2137_v16, 0.0 }
 0x2ef   : > { %v2141_v43 = vpop.f32.mrb[11].mxu1  ;;  %v1186_v23 = vmax.f32 %v2139_v42, 0.0 }
 0x2f0   : > { %v1187_v27 = vmax.f32 %v2141_v43, 0.0 }
 0x2f4   : > { %v1093_v28 = vpop.f32.mrb[12].mxu1 }
 0x2f5   : > { %v1188_v29 = vmax.f32 %v1093_v28, 0.0  ;;  %v1095_v45 = vpop.f32.mrb[13].mxu1 }
 0x2f6   : > { %v1189_v47 = vmax.f32 %v1095_v45, 0.0  ;;  %v1097_v20 = vpop.f32.mrb[14].mxu1 }
 0x2f7   : > { %v1220_v48 = vmax.f32 %v1172_v44, %v1188_v29  ;;  %v1190_v49 = vmax.f32 %v1097_v20, 0.0  ;;  %v1099_v60 = vpop.f32.mrb[15].mxu1 }
 0x2f8   : > { %v1221_v18 = vmax.f32 %v1173_v34, %v1189_v47  ;;  %v1191_v2 = vmax.f32 %v1099_v60, 0.0 }
 0x2f9   : > { %v2143_v41 = vmax.f32 %v1174_v46, %v1190_v49 }
 0x2fa   : > { %v2145_v39 = vmax.f32 %v1175_v17, %v1191_v2 }
 0x2fc   : > { %v1103_v37 = vpop.f32.mrb[16].mxu1 }
 0x2fd   : > { %v1192_v35 = vmax.f32 %v1103_v37, 0.0  ;;  %v1105_v26 = vpop.f32.mrb[17].mxu1 }
 0x2fe   : > { %v1193_v14 = vmax.f32 %v1105_v26, 0.0  ;;  %v1107_v38 = vpop.f32.mrb[18].mxu1 }
 0x2ff   : > { %v2147_v57 = vmax.f32 %v1176_v40, %v1192_v35  ;;  %v1194_v9 = vmax.f32 %v1107_v38, 0.0  ;;  %v1109_v10 = vpop.f32.mrb[19].mxu1 }
 0x300   : > { %v2149_v63 = vmax.f32 %v1177_v56, %v1193_v14  ;;  %v1195_v61 = vmax.f32 %v1109_v10, 0.0 }
 0x301   : > { %v2151_v54 = vmax.f32 %v1178_v13, %v1194_v9 }
 0x302   : > { %v2153_v62 = vmax.f32 %v1179_v36, %v1195_v61 }
 0x304   : > { %v1113_v0 = vpop.f32.mrb[20].mxu1 }
 0x305   : > { %v1196_v32 = vmax.f32 %v1113_v0, 0.0  ;;  %v1115_v50 = vpop.f32.mrb[21].mxu1 }
 0x306   : > { %v1197_v52 = vmax.f32 %v1115_v50, 0.0  ;;  %v1117_v30 = vpop.f32.mrb[22].mxu1 }
 0x307   : > { %v2155_v1 = vmax.f32 %v1180_v55, %v1196_v32  ;;  %v1198_v3 = vmax.f32 %v1117_v30, 0.0  ;;  %v1119_v4 = vpop.f32.mrb[23].mxu1 }
 0x308   : > { %v2157_v6 = vmax.f32 %v1181_v51, %v1197_v52  ;;  %v1199_v58 = vmax.f32 %v1119_v4, 0.0 }
 0x309   : > { %v2159_v11 = vmax.f32 %v1182_v53, %v1198_v3 }
 0x30a   : > { %v2161_v7 = vmax.f32 %v1183_v5, %v1199_v58 }
 0x30c   : > { %v1123_v8 = vpop.f32.mrb[24].mxu1 }
 0x30d   : > { %v1200_v31 = vmax.f32 %v1123_v8, 0.0  ;;  %v1125_v33 = vpop.f32.mrb[25].mxu1 }
 0x30e   : > { %v1201_v21 = vmax.f32 %v1125_v33, 0.0  ;;  %v1127_v22 = vpop.f32.mrb[26].mxu1 }
 0x30f   : > { %v2165_v59 = vmax.f32 %v1184_v24, %v1200_v31  ;;  %v1202_v12 = vmax.f32 %v1127_v22, 0.0  ;;  %v1129_v25 = vpop.f32.mrb[27].mxu1 }
 0x310   : > { %v2168_v44 = vmax.f32 %v1185_v19, %v1201_v21  ;;  %v1203_v28 = vmax.f32 %v1129_v25, 0.0 }
 0x311   : > { %v2171_v15 = vmax.f32 %v1186_v23, %v1202_v12 }
 0x312   : > { %v2173_v34 = vmax.f32 %v1187_v27, %v1203_v28 }
 0x314   : > { %v1133_v16 = vpop.f32.mrb[28].mxu1 }
 0x315   : > { %v1204_v29 = vmax.f32 %v1133_v16, 0.0  ;;  %v1135_v45 = vpop.f32.mrb[29].mxu1 }
 0x316   : > { %v1205_v42 = vmax.f32 %v1135_v45, 0.0  ;;  %v1137_v46 = vpop.f32.mrb[30].mxu1 }
 0x317   : > { %v1236_v47 = vmax.f32 %v1220_v48, %v1204_v29  ;;  %v1206_v20 = vmax.f32 %v1137_v46, 0.0  ;;  %v1139_v17 = vpop.f32.mrb[31].mxu1 }
 0x318   : > { %v1237_v49 = vmax.f32 %v1221_v18, %v1205_v42  ;;  %v1207_v43 = vmax.f32 %v1139_v17, 0.0 }
 0x319   : > { %1252 = vst [vmem:[%s2177_s30] sm:$0xff] %v1236_v47  ;;  %v1238_v60 = vmax.f32 %v2143_v41, %v1206_v20 }
 0x31a   : > { %1253 = vst [vmem:[%s2177_s30 + $0x8] sm:$0xff] %v1237_v49  ;;  %v1239_v2 = vmax.f32 %v2145_v39, %v1207_v43 }
 0x31b   : > { %1254 = vst [vmem:[%s2177_s30 + $0x10] sm:$0xff] %v1238_v60 }
 0x31c   : > { %1255 = vst [vmem:[%s2177_s30 + $0x18] sm:$0xff] %v1239_v2  ;;  %v1143_v48 = vpop.f32.mrb[32].mxu1 }
 0x31d   : > { %v1208_v18 = vmax.f32 %v1143_v48, 0.0  ;;  %v1145_v37 = vpop.f32.mrb[33].mxu1 }
 0x31e   : > { %v1209_v40 = vmax.f32 %v1145_v37, 0.0  ;;  %v1147_v35 = vpop.f32.mrb[34].mxu1 }
 0x31f   : > { %v1240_v26 = vmax.f32 %v2147_v57, %v1208_v18  ;;  %v1210_v56 = vmax.f32 %v1147_v35, 0.0  ;;  %v1149_v14 = vpop.f32.mrb[35].mxu1 }
 0x320   : > { %v1241_v38 = vmax.f32 %v2149_v63, %v1209_v40  ;;  %v1211_v41 = vmax.f32 %v1149_v14, 0.0 }
 0x321   : > { %1256 = vst [vmem:[%s2177_s30 + $0x20] sm:$0xff] %v1240_v26  ;;  %v1242_v39 = vmax.f32 %v2151_v54, %v1210_v56 }
 0x322   : > { %1257 = vst [vmem:[%s2177_s30 + $0x28] sm:$0xff] %v1241_v38  ;;  %v1243_v13 = vmax.f32 %v2153_v62, %v1211_v41 }
 0x323   : > { %1258 = vst [vmem:[%s2177_s30 + $0x30] sm:$0xff] %v1242_v39 }
 0x324   : > { %1259 = vst [vmem:[%s2177_s30 + $0x38] sm:$0xff] %v1243_v13  ;;  %v1153_v9 = vpop.f32.mrb[36].mxu1 }
 0x325   : > { %v1212_v10 = vmax.f32 %v1153_v9, 0.0  ;;  %v1155_v57 = vpop.f32.mrb[37].mxu1 }
 0x326   : > { %v1213_v36 = vmax.f32 %v1155_v57, 0.0  ;;  %v1157_v61 = vpop.f32.mrb[38].mxu1 }
 0x327   : > { %v1244_v63 = vmax.f32 %v2155_v1, %v1212_v10  ;;  %v1214_v0 = vmax.f32 %v1157_v61, 0.0  ;;  %v1159_v55 = vpop.f32.mrb[39].mxu1 }
 0x328   : > { %v1245_v54 = vmax.f32 %v2157_v6, %v1213_v36  ;;  %v1215_v32 = vmax.f32 %v1159_v55, 0.0 }
 0x329   : > { %1260 = vst [vmem:[%s2177_s30 + $0x40] sm:$0xff] %v1244_v63  ;;  %v1246_v62 = vmax.f32 %v2159_v11, %v1214_v0 }
 0x32a   : > { %1261 = vst [vmem:[%s2177_s30 + $0x48] sm:$0xff] %v1245_v54  ;;  %v1247_v50 = vmax.f32 %v2161_v7, %v1215_v32 }
 0x32b   : > { %1262 = vst [vmem:[%s2177_s30 + $0x50] sm:$0xff] %v1246_v62 }
 0x32c   : > { %1263 = vst [vmem:[%s2177_s30 + $0x58] sm:$0xff] %v1247_v50  ;;  %v1163_v51 = vpop.f32.mrb[40].mxu1 }
 0x32d   : > { %v1216_v52 = vmax.f32 %v1163_v51, 0.0  ;;  %v1165_v30 = vpop.f32.mrb[41].mxu1 }
 0x32e   : > { %v1217_v53 = vmax.f32 %v1165_v30, 0.0  ;;  %v1167_v1 = vpop.f32.mrb[42].mxu1 }
 0x32f   : > { %v1248_v3 = vmax.f32 %v2165_v59, %v1216_v52  ;;  %v1218_v4 = vmax.f32 %v1167_v1, 0.0  ;;  %v1169_v5 = vpop.f32.mrb[43].mxu1 }
 0x330   : > { %v1249_v6 = vmax.f32 %v2168_v44, %v1217_v53  ;;  %v1219_v58 = vmax.f32 %v1169_v5, 0.0 }
 0x331   : > { %1264 = vst [vmem:[%s2177_s30 + $0x60] sm:$0xff] %v1248_v3  ;;  %v1250_v11 = vmax.f32 %v2171_v15, %v1218_v4 }
 0x332   : > { %1265 = vst [vmem:[%s2177_s30 + $0x68] sm:$0xff] %v1249_v6  ;;  %v1251_v7 = vmax.f32 %v2173_v34, %v1219_v58 }
 0x333   : > { %1266 = vst [vmem:[%s2177_s30 + $0x70] sm:$0xff] %v1250_v11 }
 0x334   : > { %1267 = vst [vmem:[%s2177_s30 + $0x78] sm:$0xff] %v1251_v7 }
 0x335   : > { %1575 = shalt.err (!%p1572_p5)
}
 0x336   : > { %s1576_s14 = scalar_lea.hbm %s2210_s9, 2048  ;;  %s1580_s24 = scalar_lea.hbm %s2270_s4, 4096 }
 0x337   : > { %p1577_p6 = scmp.ne.s32.totalorder %s2210_s9, %s1576_s14  ;;  %p1581_p10 = scmp.lt.u32.totalorder %s2210_s9, %s2270_s4 }
 0x338   : > { %p1582_p11 = scmp.lt.u32.totalorder %s1580_s24, %s1576_s14  ;;  %p1584_p13 = scmp.lt.u32.totalorder %s1576_s14, %s2210_s9 }
 0x339   : > { %p1578_p7 = pnand %p1577_p6, %p1715_p4 }
 0x33a   : > { %p1583_p12 = por %p1582_p11, %p1581_p10 }
 0x33b   : > { %p1579_p9 = pneg %p1578_p7 }
 0x33c   : > { %p1585_p0 = por %p1584_p13, %p1583_p12 }
 0x33e   : > { %p1586_p1 = pnand %p1585_p0, %p1579_p9 }
 0x340   : > { %1589 = shalt.err (!%p1586_p1)
}
 0x341   : > { %s1648_s30 = smov 256   ;;  %s1649_s5 = smov 16  }
 0x342   : > { %1447 = dma.vmem_to_hbm [thread:$0]  (%p1715_p4), %s2212_s6, 2048, %s2210_s9, %s2220_s18, %s1648_s30, %s1648_s30, %s1649_s5  }
 0x343 PF: > { %p1453_p2 = scmp.ge.s32.totalorder %s1640_s20, 2  ;;  %s1299_s7 = sand.u32 1, %s1620_s15  }
 0x344   : > { %s1300_s8 = scalar_lea.sflag [#allocation3], %s1299_s7 }
 0x345   : > { %p1450_p3 = pnand %p1453_p2, %p1722_p8 }
 0x347   : > { %1615 = dma.done.wait (!%p1450_p3), %s1300_s8, 2048  }
 0x348   : > { %1617 = vsyncadd (!%p1450_p3), %s1300_s8, 4294965248  ;;  %s17_s20 = sadd.s32 1, %s1640_s20   ;;  %s2292_s15 = smov %s1624_s16 }
 0x349   : > { %p14_p5 = scmp.ge.s32.totalorder %s17_s20, 4   ;;  %s2293_s16 = smov %s1628_s17 }
 0x34a   : > { %s2294_s17 = smov %s1728_s28  ;;  %s2295_s18 = smov %s1636_s19 }
 0x34b   : > { %s2296_s19 = smov %s2298_s23  ;;  %16 = sbr.rel (!%p14_p5) target bundleno = 4 (0x4), region = 71 }
 0x352   :  { %1305 = vsyncpa [#allocation3], 1 }
 0x353   :  { %1307 = vsyncpa [#allocation3 + $0x1], 1 }

</bundles_post_ra>
